<compile_context>
chip_gen: v6e
topology: v6e:2x2x1
jax: 0.10.0
libtpu: 0.0.40
codegen_flags: <defaults>
</compile_context>

<pallas_src>
import functools

import jax
import jax.numpy as jnp
from jax import lax
from jax.experimental import pallas as pl
from jax.experimental.pallas import tpu as pltpu


# ----------------------------- kernel helpers ------------------------------


def _layer_norm(x, w, b, eps):
    # Single reduction pass: var = E[x^2] - mu^2 (review micro-opt).
    mu = jnp.mean(x, axis=-1, keepdims=True)
    var = jnp.maximum(jnp.mean(x * x, axis=-1, keepdims=True) - mu * mu, 0.0)
    return (x - mu) * lax.rsqrt(var + eps) * w + b


def _gelu_tanh(x):
    # PyTorch F.gelu(x, approximate='tanh'), f32 on the VPU/EUP.
    c = 0.7978845608028654  # sqrt(2/pi)
    return 0.5 * x * (1.0 + jnp.tanh(c * (x + 0.044715 * x * x * x)))


# ------------------------------ Pallas kernel ------------------------------


def encoder_kernel(
    x_ref,
    ln1w_ref, ln1b_ref,
    qw_ref, qb_ref, kw_ref, kb_ref, vw_ref, vb_ref, ow_ref, ob_ref,
    ln2w_ref, ln2b_ref,
    f1w_ref, f1b_ref, f2w_ref, f2b_ref,
    o_ref,                       # output block: also the resident activation carry
    h2_ref,                      # VMEM scratch: LN2 output, bf16, (N, E)
    *, batch_block, seq_len, num_heads, head_dim, eps, scale,
):
    l = pl.program_id(1)
    it = pl.program_id(2)
    n_rows = batch_block * seq_len
    embed = num_heads * head_dim

    # Load the input block into the resident output/carry block once per
    # batch block (layer and I-tile axes are innermost, so this is the first
    # visit of this output block).
    @pl.when((l == 0) & (it == 0))
    def _load_input():
        o_ref[...] = x_ref[...]

    # ----------------- attention + LN2 (once per layer, it == 0) -------------
    @pl.when(it == 0)
    def _attention_block():
        x = o_ref[...].reshape(n_rows, embed)            # carried activation, f32

        # LayerNorm 1 + fused QKV projections on the flattened (N, E) slab.
        h1 = _layer_norm(x, ln1w_ref[0], ln1b_ref[0], eps)
        h1b = h1.astype(jnp.bfloat16)

        q = (jnp.dot(h1b, qw_ref[0], preferred_element_type=jnp.float32)
             + qb_ref[0]) * scale                        # fold scale into Q once
        k = jnp.dot(h1b, kw_ref[0], preferred_element_type=jnp.float32) + kb_ref[0]
        v = jnp.dot(h1b, vw_ref[0], preferred_element_type=jnp.float32) + vb_ref[0]
        q16 = q.astype(jnp.bfloat16)
        k16 = k.astype(jnp.bfloat16)
        v16 = v.astype(jnp.bfloat16)
        ow = ow_ref[0]                                   # (E, E) bf16

        # TODO(synk): relayout q/k/v head-leading and fori_loop over heads for
        #             real SigLip sizes; per-head lane slices below are the
        #             remaining relayout tax.
        for b in range(batch_block):
            r0 = b * seq_len
            attn_b = jnp.zeros((seq_len, embed), jnp.float32)
            for h in range(num_heads):
                c0 = h * head_dim
                qh = q16[r0:r0 + seq_len, c0:c0 + head_dim]      # (S, Dh)
                kh = k16[r0:r0 + seq_len, c0:c0 + head_dim]
                vh = v16[r0:r0 + seq_len, c0:c0 + head_dim]
                # Q @ K^T without materializing a transpose.
                s = lax.dot_general(qh, kh, (((1,), (1,)), ((), ())),
                                    preferred_element_type=jnp.float32)  # (S, S)
                s = s - jnp.max(s, axis=-1, keepdims=True)
                p = jnp.exp(s)
                denom = jnp.sum(p, axis=-1, keepdims=True)               # (S, 1)
                oh = jnp.dot(p.astype(jnp.bfloat16), vh,
                             preferred_element_type=jnp.float32)         # (S, Dh)
                # Softmax normalization folded into the PV output (S*Dh muls).
                oh = oh * pl.reciprocal(denom, approx=True)
                # Out-projection accumulated per head -> no lane concatenates.
                attn_b = attn_b + jnp.dot(
                    oh.astype(jnp.bfloat16), ow[c0:c0 + head_dim, :],
                    preferred_element_type=jnp.float32)

            # Residual 1 (+ out-proj bias), LN2, and carry update — per batch
            # item, written straight into refs so live ranges stay bounded.
            xb = x[r0:r0 + seq_len, :] + attn_b + ob_ref[0]
            h2b = _layer_norm(xb, ln2w_ref[0], ln2b_ref[0], eps)
            h2_ref[r0:r0 + seq_len, :] = h2b.astype(jnp.bfloat16)
            # fc2 bias is layer-constant: fold it into the carry here so the
            # MLP I-tile loop is pure accumulation with no finalize branch.
            o_ref[b, :, :] = xb + f2b_ref[0]

    # --------------- MLP, tiled over the intermediate dim (every it) ---------
    h2 = h2_ref[...]                                                   # (N, E) bf16
    t = jnp.dot(h2, f1w_ref[0], preferred_element_type=jnp.float32) + f1b_ref[0]
    t = _gelu_tanh(t)
    part = jnp.dot(t.astype(jnp.bfloat16), f2w_ref[0],
                   preferred_element_type=jnp.float32)                 # (N, E)
    o_ref[...] = o_ref[...] + part.reshape(batch_block, seq_len, embed)


# ------------------------------- JAX wrapper --------------------------------


def _vmem_capacity_bytes():
    try:
        info = pltpu.get_tpu_info()
        cap = getattr(info, "vmem_capacity_bytes", None)
        if cap:
            return int(cap)
    except Exception:
        pass
    return 64 * 1024 * 1024   # conservative fallback (v7x per-TC VMEM)


def _pick_i_tile(intermediate, target=512):
    if intermediate <= target:
        return intermediate
    t = (target // 128) * 128
    while t >= 128:
        if intermediate % t == 0:
            return t
        t -= 128
    # TODO(synk): pad I (e.g. so400m 4304 -> 4352) so it I-tiles cleanly.
    return intermediate


def siglip_vision_encoder(x, params, *, num_heads, eps,
                          batch_block=1, i_tile=None):
    """Full SigLipVisionEncoder forward in one fused Pallas call.

    x: (B, S, E) float32.
    params: weights stacked over layers (leading dim L); weight matrices are
    stored as (in, out) (transposed vs torch.nn.Linear) and may be bfloat16;
    biases / LayerNorm params are float32 with shape (L, 1, E) / (L, 1, I).
    """
    B, S, E = x.shape
    L = params["q_w"].shape[0]
    I = params["fc1_w"].shape[2]
    assert B % batch_block == 0
    assert E % num_heads == 0
    if batch_block > 1:
        assert S % 8 == 0, "batch_block > 1 requires S to be sublane-aligned"
    if i_tile is None:
        i_tile = _pick_i_tile(I)
    assert I % i_tile == 0
    n_it = I // i_tile
    nb = B // batch_block
    head_dim = E // num_heads
    scale = head_dim ** (-0.5)
    n_rows = batch_block * S

    kernel = functools.partial(
        encoder_kernel,
        batch_block=batch_block, seq_len=S,
        num_heads=num_heads, head_dim=head_dim, eps=eps, scale=scale,
    )

    def layer_spec(*tail):
        n = len(tail)
        return pl.BlockSpec((1,) + tuple(tail),
                            lambda b, l, it, _n=n: (l,) + (0,) * _n)

    x_spec = pl.BlockSpec((batch_block, S, E), lambda b, l, it: (b, 0, 0))
    out_spec = pl.BlockSpec((batch_block, S, E), lambda b, l, it: (b, 0, 0))

    in_specs = [
        x_spec,
        layer_spec(1, E), layer_spec(1, E),                           # ln1 w, b
        layer_spec(E, E), layer_spec(1, E),                           # q w, b
        layer_spec(E, E), layer_spec(1, E),                           # k w, b
        layer_spec(E, E), layer_spec(1, E),                           # v w, b
        layer_spec(E, E), layer_spec(1, E),                           # out-proj w, b
        layer_spec(1, E), layer_spec(1, E),                           # ln2 w, b
        pl.BlockSpec((1, E, i_tile), lambda b, l, it: (l, 0, it)),    # fc1 w tile
        pl.BlockSpec((1, 1, i_tile), lambda b, l, it: (l, 0, it)),    # fc1 b tile
        pl.BlockSpec((1, i_tile, E), lambda b, l, it: (l, it, 0)),    # fc2 w tile
        layer_spec(1, E),                                             # fc2 b
    ]

    args = (
        x,
        params["ln1_w"], params["ln1_b"],
        params["q_w"], params["q_b"],
        params["k_w"], params["k_b"],
        params["v_w"], params["v_b"],
        params["o_w"], params["o_b"],
        params["ln2_w"], params["ln2_b"],
        params["fc1_w"], params["fc1_b"],
        params["fc2_w"], params["fc2_b"],
    )

    # --- VMEM budget (attention weights resident per layer; MLP weights
    #     streamed per I-tile; everything double-buffered by the pipeline) ---
    wbytes_attn = 4 * E * E * 2 + 10 * E * 4                 # qkvo bf16 + ln/bias f32
    wbytes_mlp_tile = 2 * E * i_tile * 2 + (i_tile + E) * 4  # fc1/fc2 tile bf16 + biases
    act_bytes = n_rows * E * 4
    vmem_needed = (
        2 * (wbytes_attn + wbytes_mlp_tile)   # double-buffered weight pipeline
        + 2 * act_bytes                       # x input block (double-buffered)
        + 2 * act_bytes                       # output/carry block
        + n_rows * E * 2                      # h2 scratch (bf16)
        + 8 * act_bytes                       # q/k/v f32+bf16 + temporaries
        + 3 * n_rows * i_tile * 4             # fc1 intermediate / gelu temps
        + 4 * S * S * 4                       # per-head attention scores
    )
    cap = _vmem_capacity_bytes()
    vmem_limit = int(min(max(int(1.5 * vmem_needed), 32 * 1024 * 1024),
                         int(cap * 0.85)))

    # --- advisory cost estimate ---
    flops = B * L * (8 * S * E * E + 4 * S * S * E + 4 * S * E * I)
    transcendentals = B * L * (num_heads * S * S + S * I + 2 * S)
    bytes_accessed = (2 * B * S * E * 4
                      + nb * L * ((4 * E * E + 2 * E * I) * 2 + (9 * E + I) * 4))

    return pl.pallas_call(
        kernel,
        out_shape=jax.ShapeDtypeStruct((B, S, E), jnp.float32),
        grid_spec=pltpu.PrefetchScalarGridSpec(
            num_scalar_prefetch=0,
            grid=(nb, L, n_it),                  # layer + I-tile axes innermost
            in_specs=in_specs,
            out_specs=out_spec,
            scratch_shapes=[pltpu.VMEM((n_rows, E), jnp.bfloat16)],   # LN2 output
        ),
        compiler_params=pltpu.CompilerParams(
            dimension_semantics=("parallel", "arbitrary", "arbitrary"),
            vmem_limit_bytes=vmem_limit,
        ),
        cost_estimate=pl.CostEstimate(
            flops=int(flops),
            transcendentals=int(transcendentals),
            bytes_accessed=int(bytes_accessed),
        ),
    )(*args)


# --------------------------- pure-JAX reference -----------------------------


def _ref_layer(x, p, num_heads, eps):
    B, S, E = x.shape
    Dh = E // num_heads
    scale = Dh ** (-0.5)
    f32 = lambda a: a.astype(jnp.float32)

    def ln(v, w, b):
        mu = jnp.mean(v, axis=-1, keepdims=True)
        var = jnp.mean((v - mu) ** 2, axis=-1, keepdims=True)
        return (v - mu) / jnp.sqrt(var + eps) * w[0] + b[0]

    res = x
    h = ln(x, p["ln1_w"], p["ln1_b"])
    q = h @ f32(p["q_w"]) + p["q_b"][0]
    k = h @ f32(p["k_w"]) + p["k_b"][0]
    v = h @ f32(p["v_w"]) + p["v_b"][0]
    q = q.reshape(B, S, num_heads, Dh).transpose(0, 2, 1, 3)
    k = k.reshape(B, S, num_heads, Dh).transpose(0, 2, 1, 3)
    v = v.reshape(B, S, num_heads, Dh).transpose(0, 2, 1, 3)
    w = jnp.einsum("bhqd,bhkd->bhqk", q, k) * scale
    w = jax.nn.softmax(w, axis=-1)
    o = jnp.einsum("bhqk,bhkd->bhqd", w, v)
    o = o.transpose(0, 2, 1, 3).reshape(B, S, E)
    o = o @ f32(p["o_w"]) + p["o_b"][0]
    x = o + res

    res = x
    h = ln(x, p["ln2_w"], p["ln2_b"])
    h = h @ f32(p["fc1_w"]) + p["fc1_b"][0]
    c = 0.7978845608028654
    h = 0.5 * h * (1.0 + jnp.tanh(c * (h + 0.044715 * h ** 3)))
    h = h @ f32(p["fc2_w"]) + p["fc2_b"][0]
    return h + res


def _ref_encoder(x, stacked, num_heads, eps):
    L = stacked["q_w"].shape[0]
    for l in range(L):
        p = {k: v[l] for k, v in stacked.items()}
        x = _ref_layer(x, p, num_heads, eps)
    return x


# ------------------------------- param init ---------------------------------


_MATRIX_KEYS = ("q_w", "k_w", "v_w", "o_w", "fc1_w", "fc2_w")


def init_stacked_params(key, num_layers, hidden_size, intermediate_size):
    E, I, L = hidden_size, intermediate_size, num_layers
    ks = jax.random.split(key, 8)
    s = 0.02

    def w(k, shape):
        return (s * jax.random.normal(k, shape)).astype(jnp.float32)

    return {
        "ln1_w": jnp.ones((L, 1, E), jnp.float32),
        "ln1_b": jnp.zeros((L, 1, E), jnp.float32),
        "q_w": w(ks[0], (L, E, E)), "q_b": jnp.zeros((L, 1, E), jnp.float32),
        "k_w": w(ks[1], (L, E, E)), "k_b": jnp.zeros((L, 1, E), jnp.float32),
        "v_w": w(ks[2], (L, E, E)), "v_b": jnp.zeros((L, 1, E), jnp.float32),
        "o_w": w(ks[3], (L, E, E)), "o_b": w(ks[4], (L, 1, E)),
        "ln2_w": jnp.ones((L, 1, E), jnp.float32),
        "ln2_b": jnp.zeros((L, 1, E), jnp.float32),
        "fc1_w": w(ks[5], (L, E, I)), "fc1_b": w(ks[6], (L, 1, I)),
        "fc2_w": w(ks[7], (L, I, E)), "fc2_b": jnp.zeros((L, 1, E), jnp.float32),
    }


def cast_weights_bf16(params):
    return {k: (v.astype(jnp.bfloat16) if k in _MATRIX_KEYS else v)
            for k, v in params.items()}


# ---------------------------------- main -------------------------------------


if __name__ == "__main__":
    # Small config consistent with SiglipVisionConfig semantics.
    batch = 4
    seq = 16               # num_patches
    hidden_size = 32       # embed_dim
    intermediate_size = 256
    num_heads = 4          # head_dim = 8
    num_layers = 2
    eps = 1e-6

    key = jax.random.PRNGKey(0)
    k_x, k_p = jax.random.split(key)

    x = jax.random.normal(k_x, (batch, seq, hidden_size), dtype=jnp.float32)
    params = cast_weights_bf16(
        init_stacked_params(k_p, num_layers, hidden_size, intermediate_size))

    # batch_block=2 -> nb=2 parallel steps (keeps both v7x TCs busy);
    # i_tile=128 -> two MLP I-tiles, exercising the intermediate-dim tiling.
    out = siglip_vision_encoder(x, params, num_heads=num_heads, eps=eps,
                                batch_block=2, i_tile=128)
    out = jax.block_until_ready(out)

    ref = _ref_encoder(x, params, num_heads, eps)
    assert out.shape == (batch, seq, hidden_size)
    max_err = float(jnp.max(jnp.abs(out - ref)))
    assert jnp.allclose(out, ref, atol=2e-2, rtol=2e-2), max_err

    print("KERNEL_OK")
</pallas_src>

<mosaic_0001>
module attributes {stable_mosaic.version = 11 : i64} {
  func.func @encoder_kernel(%arg0: i32, %arg1: i32, %arg2: i32, %arg3: memref<2x16x32xf32, #tpu.memory_space<vmem>>, %arg4: memref<1x1x32xf32, #tpu.memory_space<vmem>>, %arg5: memref<1x1x32xf32, #tpu.memory_space<vmem>>, %arg6: memref<1x32x32xbf16, #tpu.memory_space<vmem>>, %arg7: memref<1x1x32xf32, #tpu.memory_space<vmem>>, %arg8: memref<1x32x32xbf16, #tpu.memory_space<vmem>>, %arg9: memref<1x1x32xf32, #tpu.memory_space<vmem>>, %arg10: memref<1x32x32xbf16, #tpu.memory_space<vmem>>, %arg11: memref<1x1x32xf32, #tpu.memory_space<vmem>>, %arg12: memref<1x32x32xbf16, #tpu.memory_space<vmem>>, %arg13: memref<1x1x32xf32, #tpu.memory_space<vmem>>, %arg14: memref<1x1x32xf32, #tpu.memory_space<vmem>>, %arg15: memref<1x1x32xf32, #tpu.memory_space<vmem>>, %arg16: memref<1x32x128xbf16, #tpu.memory_space<vmem>>, %arg17: memref<1x1x128xf32, #tpu.memory_space<vmem>>, %arg18: memref<1x128x32xbf16, #tpu.memory_space<vmem>>, %arg19: memref<1x1x32xf32, #tpu.memory_space<vmem>>, %arg20: memref<2x16x32xf32, #tpu.memory_space<vmem>>, %arg21: memref<32x32xbf16, #tpu.memory_space<vmem>>) attributes {dimension_semantics = [#tpu.dimension_semantics<parallel>, #tpu.dimension_semantics<arbitrary>, #tpu.dimension_semantics<arbitrary>], iteration_bounds = array<i64: 2, 2, 2>, scalar_prefetch = 0 : i64, scratch_operands = 1 : i64, tpu.core_type = #tpu.core_type<tc>, window_params = [{transform_indices = @transform_0, window_bounds = array<i64: 2, 16, 32>}, {transform_indices = @transform_1, window_bounds = array<i64: 1, 1, 32>}, {transform_indices = @transform_2, window_bounds = array<i64: 1, 1, 32>}, {transform_indices = @transform_3, window_bounds = array<i64: 1, 32, 32>}, {transform_indices = @transform_4, window_bounds = array<i64: 1, 1, 32>}, {transform_indices = @transform_5, window_bounds = array<i64: 1, 32, 32>}, {transform_indices = @transform_6, window_bounds = array<i64: 1, 1, 32>}, {transform_indices = @transform_7, window_bounds = array<i64: 1, 32, 32>}, {transform_indices = @transform_8, window_bounds = array<i64: 1, 1, 32>}, {transform_indices = @transform_9, window_bounds = array<i64: 1, 32, 32>}, {transform_indices = @transform_10, window_bounds = array<i64: 1, 1, 32>}, {transform_indices = @transform_11, window_bounds = array<i64: 1, 1, 32>}, {transform_indices = @transform_12, window_bounds = array<i64: 1, 1, 32>}, {transform_indices = @transform_13, window_bounds = array<i64: 1, 32, 128>}, {transform_indices = @transform_14, window_bounds = array<i64: 1, 1, 128>}, {transform_indices = @transform_15, window_bounds = array<i64: 1, 128, 32>}, {transform_indices = @transform_16, window_bounds = array<i64: 1, 1, 32>}, {transform_indices = @transform_17, window_bounds = array<i64: 2, 16, 32>}]} {
    %c0_i32 = arith.constant 0 : i32
    %0 = arith.cmpi eq, %arg1, %c0_i32 : i32
    %c0_i32_0 = arith.constant 0 : i32
    %1 = arith.cmpi eq, %arg2, %c0_i32_0 : i32
    %2 = arith.andi %0, %1 : i1
    %3 = arith.extui %2 : i1 to i32
    %c0_i32_1 = arith.constant 0 : i32
    %4 = arith.cmpi ne, %3, %c0_i32_1 : i32
    scf.if %4 {
      %c0_25 = arith.constant 0 : index
      %c0_26 = arith.constant 0 : index
      %c0_27 = arith.constant 0 : index
      %37 = vector.load %arg3[%c0_25, %c0_26, %c0_27] : memref<2x16x32xf32, #tpu.memory_space<vmem>>, vector<2x16x32xf32>
      %c0_28 = arith.constant 0 : index
      %c0_29 = arith.constant 0 : index
      %c0_30 = arith.constant 0 : index
      %38 = vector.load %arg20[%c0_28, %c0_29, %c0_30] : memref<2x16x32xf32, #tpu.memory_space<vmem>>, vector<2x16x32xf32>
      tpu.vector_store %arg20[%c0_28, %c0_29, %c0_30], %37 {strides = array<i32>} : memref<2x16x32xf32, #tpu.memory_space<vmem>>, vector<2x16x32xf32>,
    } else {
    }
    %c0_i32_2 = arith.constant 0 : i32
    %5 = arith.cmpi eq, %arg2, %c0_i32_2 : i32
    %6 = arith.extui %5 : i1 to i32
    %c0_i32_3 = arith.constant 0 : i32
    %7 = arith.cmpi ne, %6, %c0_i32_3 : i32
    scf.if %7 {
      %c0_25 = arith.constant 0 : index
      %c0_26 = arith.constant 0 : index
      %c0_27 = arith.constant 0 : index
      %37 = vector.load %arg20[%c0_25, %c0_26, %c0_27] : memref<2x16x32xf32, #tpu.memory_space<vmem>>, vector<2x16x32xf32>
      %38 = vector.shape_cast %37 : vector<2x16x32xf32> to vector<32x32xf32>
      %c0_28 = arith.constant 0 : index
      %c0_29 = arith.constant 0 : index
      %c0_30 = arith.constant 0 : index
      %39 = vector.load %arg4[%c0_28, %c0_29, %c0_30] : memref<1x1x32xf32, #tpu.memory_space<vmem>>, vector<1x1x32xf32>
      %40 = vector.shape_cast %39 : vector<1x1x32xf32> to vector<1x32xf32>
      %c0_31 = arith.constant 0 : index
      %c0_32 = arith.constant 0 : index
      %c0_33 = arith.constant 0 : index
      %41 = vector.load %arg5[%c0_31, %c0_32, %c0_33] : memref<1x1x32xf32, #tpu.memory_space<vmem>>, vector<1x1x32xf32>
      %42 = vector.shape_cast %41 : vector<1x1x32xf32> to vector<1x32xf32>
      %cst_34 = arith.constant dense<0.000000e+00> : vector<32xf32>
      %43 = vector.multi_reduction <add>, %38, %cst_34 [1] : vector<32x32xf32> to vector<32xf32>
      %44 = vector.shape_cast %43 : vector<32xf32> to vector<32x1xf32>
      %cst_35 = arith.constant 3.200000e+01 : f32
      %45 = vector.broadcast %cst_35 : f32 to vector<32x1xf32>
      %46 = arith.divf %44, %45 : vector<32x1xf32>
      %47 = arith.mulf %38, %38 : vector<32x32xf32>
      %cst_36 = arith.constant dense<0.000000e+00> : vector<32xf32>
      %48 = vector.multi_reduction <add>, %47, %cst_36 [1] : vector<32x32xf32> to vector<32xf32>
      %49 = vector.shape_cast %48 : vector<32xf32> to vector<32x1xf32>
      %cst_37 = arith.constant 3.200000e+01 : f32
      %50 = vector.broadcast %cst_37 : f32 to vector<32x1xf32>
      %51 = arith.divf %49, %50 : vector<32x1xf32>
      %52 = arith.mulf %46, %46 : vector<32x1xf32>
      %53 = arith.subf %51, %52 : vector<32x1xf32>
      %cst_38 = arith.constant 0.000000e+00 : f32
      %54 = vector.broadcast %cst_38 : f32 to vector<32x1xf32>
      %55 = arith.maximumf %53, %54 : vector<32x1xf32>
      %56 = vector.broadcast %46 : vector<32x1xf32> to vector<32x32xf32>
      %57 = arith.subf %38, %56 : vector<32x32xf32>
      %cst_39 = arith.constant 9.99999997E-7 : f32
      %58 = vector.broadcast %cst_39 : f32 to vector<32x1xf32>
      %59 = arith.addf %55, %58 : vector<32x1xf32>
      %60 = math.rsqrt %59 : vector<32x1xf32>
      %61 = vector.broadcast %60 : vector<32x1xf32> to vector<32x32xf32>
      %62 = arith.mulf %57, %61 : vector<32x32xf32>
      %63 = vector.broadcast %40 : vector<1x32xf32> to vector<32x32xf32>
      %64 = arith.mulf %62, %63 : vector<32x32xf32>
      %65 = vector.broadcast %42 : vector<1x32xf32> to vector<32x32xf32>
      %66 = arith.addf %64, %65 : vector<32x32xf32>
      %67 = arith.truncf %66 : vector<32x32xf32> to vector<32x32xbf16>
      %c0_40 = arith.constant 0 : index
      %c0_41 = arith.constant 0 : index
      %c0_42 = arith.constant 0 : index
      %68 = vector.load %arg6[%c0_40, %c0_41, %c0_42] : memref<1x32x32xbf16, #tpu.memory_space<vmem>>, vector<1x32x32xbf16>
      %69 = vector.shape_cast %68 : vector<1x32x32xbf16> to vector<32x32xbf16>
      %cst_43 = arith.constant dense<0.000000e+00> : vector<32x32xf32>
      %70 = tpu.matmul %67, %69, %cst_43 {dimension_numbers = #tpu.dot_dimension_numbers<[1], [0], [0], [1], [0, 0, 1, 1], [], []>} : vector<32x32xbf16>, vector<32x32xbf16>, vector<32x32xf32> -> vector<32x32xf32>
      %c0_44 = arith.constant 0 : index
      %c0_45 = arith.constant 0 : index
      %c0_46 = arith.constant 0 : index
      %71 = vector.load %arg7[%c0_44, %c0_45, %c0_46] : memref<1x1x32xf32, #tpu.memory_space<vmem>>, vector<1x1x32xf32>
      %72 = vector.shape_cast %71 : vector<1x1x32xf32> to vector<1x32xf32>
      %73 = vector.broadcast %72 : vector<1x32xf32> to vector<32x32xf32>
      %74 = arith.addf %70, %73 : vector<32x32xf32>
      %cst_47 = arith.constant 0.353553385 : f32
      %75 = vector.broadcast %cst_47 : f32 to vector<32x32xf32>
      %76 = arith.mulf %74, %75 : vector<32x32xf32>
      %c0_48 = arith.constant 0 : index
      %c0_49 = arith.constant 0 : index
      %c0_50 = arith.constant 0 : index
      %77 = vector.load %arg8[%c0_48, %c0_49, %c0_50] : memref<1x32x32xbf16, #tpu.memory_space<vmem>>, vector<1x32x32xbf16>
      %78 = vector.shape_cast %77 : vector<1x32x32xbf16> to vector<32x32xbf16>
      %cst_51 = arith.constant dense<0.000000e+00> : vector<32x32xf32>
      %79 = tpu.matmul %67, %78, %cst_51 {dimension_numbers = #tpu.dot_dimension_numbers<[1], [0], [0], [1], [0, 0, 1, 1], [], []>} : vector<32x32xbf16>, vector<32x32xbf16>, vector<32x32xf32> -> vector<32x32xf32>
      %c0_52 = arith.constant 0 : index
      %c0_53 = arith.constant 0 : index
      %c0_54 = arith.constant 0 : index
      %80 = vector.load %arg9[%c0_52, %c0_53, %c0_54] : memref<1x1x32xf32, #tpu.memory_space<vmem>>, vector<1x1x32xf32>
      %81 = vector.shape_cast %80 : vector<1x1x32xf32> to vector<1x32xf32>
      %82 = vector.broadcast %81 : vector<1x32xf32> to vector<32x32xf32>
      %83 = arith.addf %79, %82 : vector<32x32xf32>
      %c0_55 = arith.constant 0 : index
      %c0_56 = arith.constant 0 : index
      %c0_57 = arith.constant 0 : index
      %84 = vector.load %arg10[%c0_55, %c0_56, %c0_57] : memref<1x32x32xbf16, #tpu.memory_space<vmem>>, vector<1x32x32xbf16>
      %85 = vector.shape_cast %84 : vector<1x32x32xbf16> to vector<32x32xbf16>
      %cst_58 = arith.constant dense<0.000000e+00> : vector<32x32xf32>
      %86 = tpu.matmul %67, %85, %cst_58 {dimension_numbers = #tpu.dot_dimension_numbers<[1], [0], [0], [1], [0, 0, 1, 1], [], []>} : vector<32x32xbf16>, vector<32x32xbf16>, vector<32x32xf32> -> vector<32x32xf32>
      %c0_59 = arith.constant 0 : index
      %c0_60 = arith.constant 0 : index
      %c0_61 = arith.constant 0 : index
      %87 = vector.load %arg11[%c0_59, %c0_60, %c0_61] : memref<1x1x32xf32, #tpu.memory_space<vmem>>, vector<1x1x32xf32>
      %88 = vector.shape_cast %87 : vector<1x1x32xf32> to vector<1x32xf32>
      %89 = vector.broadcast %88 : vector<1x32xf32> to vector<32x32xf32>
      %90 = arith.addf %86, %89 : vector<32x32xf32>
      %91 = arith.truncf %76 : vector<32x32xf32> to vector<32x32xbf16>
      %92 = arith.truncf %83 : vector<32x32xf32> to vector<32x32xbf16>
      %93 = arith.truncf %90 : vector<32x32xf32> to vector<32x32xbf16>
      %c0_62 = arith.constant 0 : index
      %c0_63 = arith.constant 0 : index
      %c0_64 = arith.constant 0 : index
      %94 = vector.load %arg12[%c0_62, %c0_63, %c0_64] : memref<1x32x32xbf16, #tpu.memory_space<vmem>>, vector<1x32x32xbf16>
      %95 = vector.shape_cast %94 : vector<1x32x32xbf16> to vector<32x32xbf16>
      %cst_65 = arith.constant 0.000000e+00 : f32
      %96 = vector.broadcast %cst_65 : f32 to vector<16x32xf32>
      %97 = vector.extract_strided_slice %91 {offsets = [0, 0], sizes = [16, 8], strides = [1, 1]} : vector<32x32xbf16> to vector<16x8xbf16>
      %98 = vector.extract_strided_slice %92 {offsets = [0, 0], sizes = [16, 8], strides = [1, 1]} : vector<32x32xbf16> to vector<16x8xbf16>
      %99 = vector.extract_strided_slice %93 {offsets = [0, 0], sizes = [16, 8], strides = [1, 1]} : vector<32x32xbf16> to vector<16x8xbf16>
      %cst_66 = arith.constant dense<0.000000e+00> : vector<16x16xf32>
      %100 = tpu.matmul %97, %98, %cst_66 {dimension_numbers = #tpu.dot_dimension_numbers<[1], [1], [0], [0], [0, 0, 1, 0], [], []>} : vector<16x8xbf16>, vector<16x8xbf16>, vector<16x16xf32> -> vector<16x16xf32>
      %cst_67 = arith.constant dense<0xFF800000> : vector<16xf32>
      %101 = vector.multi_reduction <maximumf>, %100, %cst_67 [1] : vector<16x16xf32> to vector<16xf32>
      %102 = vector.shape_cast %101 : vector<16xf32> to vector<16x1xf32>
      %103 = vector.broadcast %102 : vector<16x1xf32> to vector<16x16xf32>
      %104 = arith.subf %100, %103 : vector<16x16xf32>
      %105 = math.exp %104 : vector<16x16xf32>
      %cst_68 = arith.constant dense<0.000000e+00> : vector<16xf32>
      %106 = vector.multi_reduction <add>, %105, %cst_68 [1] : vector<16x16xf32> to vector<16xf32>
      %107 = vector.shape_cast %106 : vector<16xf32> to vector<16x1xf32>
      %108 = arith.truncf %105 : vector<16x16xf32> to vector<16x16xbf16>
      %cst_69 = arith.constant dense<0.000000e+00> : vector<16x8xf32>
      %109 = tpu.matmul %108, %99, %cst_69 {dimension_numbers = #tpu.dot_dimension_numbers<[1], [0], [0], [1], [0, 0, 1, 1], [], []>} : vector<16x16xbf16>, vector<16x8xbf16>, vector<16x8xf32> -> vector<16x8xf32>
      %110 = tpu.reciprocal %107 {approx = true} : vector<16x1xf32> -> vector<16x1xf32>
      %111 = vector.broadcast %110 : vector<16x1xf32> to vector<16x8xf32>
      %112 = arith.mulf %109, %111 : vector<16x8xf32>
      %113 = arith.truncf %112 : vector<16x8xf32> to vector<16x8xbf16>
      %114 = vector.extract_strided_slice %95 {offsets = [0, 0], sizes = [8, 32], strides = [1, 1]} : vector<32x32xbf16> to vector<8x32xbf16>
      %cst_70 = arith.constant dense<0.000000e+00> : vector<16x32xf32>
      %115 = tpu.matmul %113, %114, %cst_70 {dimension_numbers = #tpu.dot_dimension_numbers<[1], [0], [0], [1], [0, 0, 1, 1], [], []>} : vector<16x8xbf16>, vector<8x32xbf16>, vector<16x32xf32> -> vector<16x32xf32>
      %116 = arith.addf %96, %115 : vector<16x32xf32>
      %117 = vector.extract_strided_slice %91 {offsets = [0, 8], sizes = [16, 8], strides = [1, 1]} : vector<32x32xbf16> to vector<16x8xbf16>
      %118 = vector.extract_strided_slice %92 {offsets = [0, 8], sizes = [16, 8], strides = [1, 1]} : vector<32x32xbf16> to vector<16x8xbf16>
      %119 = vector.extract_strided_slice %93 {offsets = [0, 8], sizes = [16, 8], strides = [1, 1]} : vector<32x32xbf16> to vector<16x8xbf16>
      %cst_71 = arith.constant dense<0.000000e+00> : vector<16x16xf32>
      %120 = tpu.matmul %117, %118, %cst_71 {dimension_numbers = #tpu.dot_dimension_numbers<[1], [1], [0], [0], [0, 0, 1, 0], [], []>} : vector<16x8xbf16>, vector<16x8xbf16>, vector<16x16xf32> -> vector<16x16xf32>
      %cst_72 = arith.constant dense<0xFF800000> : vector<16xf32>
      %121 = vector.multi_reduction <maximumf>, %120, %cst_72 [1] : vector<16x16xf32> to vector<16xf32>
      %122 = vector.shape_cast %121 : vector<16xf32> to vector<16x1xf32>
      %123 = vector.broadcast %122 : vector<16x1xf32> to vector<16x16xf32>
      %124 = arith.subf %120, %123 : vector<16x16xf32>
      %125 = math.exp %124 : vector<16x16xf32>
      %cst_73 = arith.constant dense<0.000000e+00> : vector<16xf32>
      %126 = vector.multi_reduction <add>, %125, %cst_73 [1] : vector<16x16xf32> to vector<16xf32>
      %127 = vector.shape_cast %126 : vector<16xf32> to vector<16x1xf32>
      %128 = arith.truncf %125 : vector<16x16xf32> to vector<16x16xbf16>
      %cst_74 = arith.constant dense<0.000000e+00> : vector<16x8xf32>
      %129 = tpu.matmul %128, %119, %cst_74 {dimension_numbers = #tpu.dot_dimension_numbers<[1], [0], [0], [1], [0, 0, 1, 1], [], []>} : vector<16x16xbf16>, vector<16x8xbf16>, vector<16x8xf32> -> vector<16x8xf32>
      %130 = tpu.reciprocal %127 {approx = true} : vector<16x1xf32> -> vector<16x1xf32>
      %131 = vector.broadcast %130 : vector<16x1xf32> to vector<16x8xf32>
      %132 = arith.mulf %129, %131 : vector<16x8xf32>
      %133 = arith.truncf %132 : vector<16x8xf32> to vector<16x8xbf16>
      %134 = vector.extract_strided_slice %95 {offsets = [8, 0], sizes = [8, 32], strides = [1, 1]} : vector<32x32xbf16> to vector<8x32xbf16>
      %cst_75 = arith.constant dense<0.000000e+00> : vector<16x32xf32>
      %135 = tpu.matmul %133, %134, %cst_75 {dimension_numbers = #tpu.dot_dimension_numbers<[1], [0], [0], [1], [0, 0, 1, 1], [], []>} : vector<16x8xbf16>, vector<8x32xbf16>, vector<16x32xf32> -> vector<16x32xf32>
      %136 = arith.addf %116, %135 : vector<16x32xf32>
      %137 = vector.extract_strided_slice %91 {offsets = [0, 16], sizes = [16, 8], strides = [1, 1]} : vector<32x32xbf16> to vector<16x8xbf16>
      %138 = vector.extract_strided_slice %92 {offsets = [0, 16], sizes = [16, 8], strides = [1, 1]} : vector<32x32xbf16> to vector<16x8xbf16>
      %139 = vector.extract_strided_slice %93 {offsets = [0, 16], sizes = [16, 8], strides = [1, 1]} : vector<32x32xbf16> to vector<16x8xbf16>
      %cst_76 = arith.constant dense<0.000000e+00> : vector<16x16xf32>
      %140 = tpu.matmul %137, %138, %cst_76 {dimension_numbers = #tpu.dot_dimension_numbers<[1], [1], [0], [0], [0, 0, 1, 0], [], []>} : vector<16x8xbf16>, vector<16x8xbf16>, vector<16x16xf32> -> vector<16x16xf32>
      %cst_77 = arith.constant dense<0xFF800000> : vector<16xf32>
      %141 = vector.multi_reduction <maximumf>, %140, %cst_77 [1] : vector<16x16xf32> to vector<16xf32>
      %142 = vector.shape_cast %141 : vector<16xf32> to vector<16x1xf32>
      %143 = vector.broadcast %142 : vector<16x1xf32> to vector<16x16xf32>
      %144 = arith.subf %140, %143 : vector<16x16xf32>
      %145 = math.exp %144 : vector<16x16xf32>
      %cst_78 = arith.constant dense<0.000000e+00> : vector<16xf32>
      %146 = vector.multi_reduction <add>, %145, %cst_78 [1] : vector<16x16xf32> to vector<16xf32>
      %147 = vector.shape_cast %146 : vector<16xf32> to vector<16x1xf32>
      %148 = arith.truncf %145 : vector<16x16xf32> to vector<16x16xbf16>
      %cst_79 = arith.constant dense<0.000000e+00> : vector<16x8xf32>
      %149 = tpu.matmul %148, %139, %cst_79 {dimension_numbers = #tpu.dot_dimension_numbers<[1], [0], [0], [1], [0, 0, 1, 1], [], []>} : vector<16x16xbf16>, vector<16x8xbf16>, vector<16x8xf32> -> vector<16x8xf32>
      %150 = tpu.reciprocal %147 {approx = true} : vector<16x1xf32> -> vector<16x1xf32>
      %151 = vector.broadcast %150 : vector<16x1xf32> to vector<16x8xf32>
      %152 = arith.mulf %149, %151 : vector<16x8xf32>
      %153 = arith.truncf %152 : vector<16x8xf32> to vector<16x8xbf16>
      %154 = vector.extract_strided_slice %95 {offsets = [16, 0], sizes = [8, 32], strides = [1, 1]} : vector<32x32xbf16> to vector<8x32xbf16>
      %cst_80 = arith.constant dense<0.000000e+00> : vector<16x32xf32>
      %155 = tpu.matmul %153, %154, %cst_80 {dimension_numbers = #tpu.dot_dimension_numbers<[1], [0], [0], [1], [0, 0, 1, 1], [], []>} : vector<16x8xbf16>, vector<8x32xbf16>, vector<16x32xf32> -> vector<16x32xf32>
      %156 = arith.addf %136, %155 : vector<16x32xf32>
      %157 = vector.extract_strided_slice %91 {offsets = [0, 24], sizes = [16, 8], strides = [1, 1]} : vector<32x32xbf16> to vector<16x8xbf16>
      %158 = vector.extract_strided_slice %92 {offsets = [0, 24], sizes = [16, 8], strides = [1, 1]} : vector<32x32xbf16> to vector<16x8xbf16>
      %159 = vector.extract_strided_slice %93 {offsets = [0, 24], sizes = [16, 8], strides = [1, 1]} : vector<32x32xbf16> to vector<16x8xbf16>
      %cst_81 = arith.constant dense<0.000000e+00> : vector<16x16xf32>
      %160 = tpu.matmul %157, %158, %cst_81 {dimension_numbers = #tpu.dot_dimension_numbers<[1], [1], [0], [0], [0, 0, 1, 0], [], []>} : vector<16x8xbf16>, vector<16x8xbf16>, vector<16x16xf32> -> vector<16x16xf32>
      %cst_82 = arith.constant dense<0xFF800000> : vector<16xf32>
      %161 = vector.multi_reduction <maximumf>, %160, %cst_82 [1] : vector<16x16xf32> to vector<16xf32>
      %162 = vector.shape_cast %161 : vector<16xf32> to vector<16x1xf32>
      %163 = vector.broadcast %162 : vector<16x1xf32> to vector<16x16xf32>
      %164 = arith.subf %160, %163 : vector<16x16xf32>
      %165 = math.exp %164 : vector<16x16xf32>
      %cst_83 = arith.constant dense<0.000000e+00> : vector<16xf32>
      %166 = vector.multi_reduction <add>, %165, %cst_83 [1] : vector<16x16xf32> to vector<16xf32>
      %167 = vector.shape_cast %166 : vector<16xf32> to vector<16x1xf32>
      %168 = arith.truncf %165 : vector<16x16xf32> to vector<16x16xbf16>
      %cst_84 = arith.constant dense<0.000000e+00> : vector<16x8xf32>
      %169 = tpu.matmul %168, %159, %cst_84 {dimension_numbers = #tpu.dot_dimension_numbers<[1], [0], [0], [1], [0, 0, 1, 1], [], []>} : vector<16x16xbf16>, vector<16x8xbf16>, vector<16x8xf32> -> vector<16x8xf32>
      %170 = tpu.reciprocal %167 {approx = true} : vector<16x1xf32> -> vector<16x1xf32>
      %171 = vector.broadcast %170 : vector<16x1xf32> to vector<16x8xf32>
      %172 = arith.mulf %169, %171 : vector<16x8xf32>
      %173 = arith.truncf %172 : vector<16x8xf32> to vector<16x8xbf16>
      %174 = vector.extract_strided_slice %95 {offsets = [24, 0], sizes = [8, 32], strides = [1, 1]} : vector<32x32xbf16> to vector<8x32xbf16>
      %cst_85 = arith.constant dense<0.000000e+00> : vector<16x32xf32>
      %175 = tpu.matmul %173, %174, %cst_85 {dimension_numbers = #tpu.dot_dimension_numbers<[1], [0], [0], [1], [0, 0, 1, 1], [], []>} : vector<16x8xbf16>, vector<8x32xbf16>, vector<16x32xf32> -> vector<16x32xf32>
      %176 = arith.addf %156, %175 : vector<16x32xf32>
      %177 = vector.extract_strided_slice %38 {offsets = [0, 0], sizes = [16, 32], strides = [1, 1]} : vector<32x32xf32> to vector<16x32xf32>
      %178 = arith.addf %177, %176 : vector<16x32xf32>
      %c0_86 = arith.constant 0 : index
      %c0_87 = arith.constant 0 : index
      %c0_88 = arith.constant 0 : index
      %179 = vector.load %arg13[%c0_86, %c0_87, %c0_88] : memref<1x1x32xf32, #tpu.memory_space<vmem>>, vector<1x1x32xf32>
      %180 = vector.shape_cast %179 : vector<1x1x32xf32> to vector<1x32xf32>
      %181 = vector.broadcast %180 : vector<1x32xf32> to vector<16x32xf32>
      %182 = arith.addf %178, %181 : vector<16x32xf32>
      %c0_89 = arith.constant 0 : index
      %c0_90 = arith.constant 0 : index
      %c0_91 = arith.constant 0 : index
      %183 = vector.load %arg14[%c0_89, %c0_90, %c0_91] : memref<1x1x32xf32, #tpu.memory_space<vmem>>, vector<1x1x32xf32>
      %184 = vector.shape_cast %183 : vector<1x1x32xf32> to vector<1x32xf32>
      %c0_92 = arith.constant 0 : index
      %c0_93 = arith.constant 0 : index
      %c0_94 = arith.constant 0 : index
      %185 = vector.load %arg15[%c0_92, %c0_93, %c0_94] : memref<1x1x32xf32, #tpu.memory_space<vmem>>, vector<1x1x32xf32>
      %186 = vector.shape_cast %185 : vector<1x1x32xf32> to vector<1x32xf32>
      %cst_95 = arith.constant dense<0.000000e+00> : vector<16xf32>
      %187 = vector.multi_reduction <add>, %182, %cst_95 [1] : vector<16x32xf32> to vector<16xf32>
      %188 = vector.shape_cast %187 : vector<16xf32> to vector<16x1xf32>
      %cst_96 = arith.constant 3.200000e+01 : f32
      %189 = vector.broadcast %cst_96 : f32 to vector<16x1xf32>
      %190 = arith.divf %188, %189 : vector<16x1xf32>
      %191 = arith.mulf %182, %182 : vector<16x32xf32>
      %cst_97 = arith.constant dense<0.000000e+00> : vector<16xf32>
      %192 = vector.multi_reduction <add>, %191, %cst_97 [1] : vector<16x32xf32> to vector<16xf32>
      %193 = vector.shape_cast %192 : vector<16xf32> to vector<16x1xf32>
      %cst_98 = arith.constant 3.200000e+01 : f32
      %194 = vector.broadcast %cst_98 : f32 to vector<16x1xf32>
      %195 = arith.divf %193, %194 : vector<16x1xf32>
      %196 = arith.mulf %190, %190 : vector<16x1xf32>
      %197 = arith.subf %195, %196 : vector<16x1xf32>
      %cst_99 = arith.constant 0.000000e+00 : f32
      %198 = vector.broadcast %cst_99 : f32 to vector<16x1xf32>
      %199 = arith.maximumf %197, %198 : vector<16x1xf32>
      %200 = vector.broadcast %190 : vector<16x1xf32> to vector<16x32xf32>
      %201 = arith.subf %182, %200 : vector<16x32xf32>
      %cst_100 = arith.constant 9.99999997E-7 : f32
      %202 = vector.broadcast %cst_100 : f32 to vector<16x1xf32>
      %203 = arith.addf %199, %202 : vector<16x1xf32>
      %204 = math.rsqrt %203 : vector<16x1xf32>
      %205 = vector.broadcast %204 : vector<16x1xf32> to vector<16x32xf32>
      %206 = arith.mulf %201, %205 : vector<16x32xf32>
      %207 = vector.broadcast %184 : vector<1x32xf32> to vector<16x32xf32>
      %208 = arith.mulf %206, %207 : vector<16x32xf32>
      %209 = vector.broadcast %186 : vector<1x32xf32> to vector<16x32xf32>
      %210 = arith.addf %208, %209 : vector<16x32xf32>
      %211 = arith.truncf %210 : vector<16x32xf32> to vector<16x32xbf16>
      %c0_101 = arith.constant 0 : index
      %c0_102 = arith.constant 0 : index
      %212 = vector.load %arg21[%c0_101, %c0_102] : memref<32x32xbf16, #tpu.memory_space<vmem>>, vector<16x32xbf16>
      tpu.vector_store %arg21[%c0_101, %c0_102], %211 {strides = array<i32>} : memref<32x32xbf16, #tpu.memory_space<vmem>>, vector<16x32xbf16>,
      %c0_103 = arith.constant 0 : index
      %c0_104 = arith.constant 0 : index
      %c0_105 = arith.constant 0 : index
      %213 = vector.load %arg19[%c0_103, %c0_104, %c0_105] : memref<1x1x32xf32, #tpu.memory_space<vmem>>, vector<1x1x32xf32>
      %214 = vector.shape_cast %213 : vector<1x1x32xf32> to vector<1x32xf32>
      %215 = vector.broadcast %214 : vector<1x32xf32> to vector<16x32xf32>
      %216 = arith.addf %182, %215 : vector<16x32xf32>
      %c0_106 = arith.constant 0 : index
      %c0_107 = arith.constant 0 : index
      %c0_108 = arith.constant 0 : index
      %217 = vector.load %arg20[%c0_106, %c0_107, %c0_108] : memref<2x16x32xf32, #tpu.memory_space<vmem>>, vector<1x16x32xf32>
      %218 = vector.shape_cast %217 : vector<1x16x32xf32> to vector<16x32xf32>
      %219 = vector.shape_cast %216 : vector<16x32xf32> to vector<1x16x32xf32>
      tpu.vector_store %arg20[%c0_106, %c0_107, %c0_108], %219 {strides = array<i32>} : memref<2x16x32xf32, #tpu.memory_space<vmem>>, vector<1x16x32xf32>,
      %cst_109 = arith.constant 0.000000e+00 : f32
      %220 = vector.broadcast %cst_109 : f32 to vector<16x32xf32>
      %221 = vector.extract_strided_slice %91 {offsets = [16, 0], sizes = [16, 8], strides = [1, 1]} : vector<32x32xbf16> to vector<16x8xbf16>
      %222 = vector.extract_strided_slice %92 {offsets = [16, 0], sizes = [16, 8], strides = [1, 1]} : vector<32x32xbf16> to vector<16x8xbf16>
      %223 = vector.extract_strided_slice %93 {offsets = [16, 0], sizes = [16, 8], strides = [1, 1]} : vector<32x32xbf16> to vector<16x8xbf16>
      %cst_110 = arith.constant dense<0.000000e+00> : vector<16x16xf32>
      %224 = tpu.matmul %221, %222, %cst_110 {dimension_numbers = #tpu.dot_dimension_numbers<[1], [1], [0], [0], [0, 0, 1, 0], [], []>} : vector<16x8xbf16>, vector<16x8xbf16>, vector<16x16xf32> -> vector<16x16xf32>
      %cst_111 = arith.constant dense<0xFF800000> : vector<16xf32>
      %225 = vector.multi_reduction <maximumf>, %224, %cst_111 [1] : vector<16x16xf32> to vector<16xf32>
      %226 = vector.shape_cast %225 : vector<16xf32> to vector<16x1xf32>
      %227 = vector.broadcast %226 : vector<16x1xf32> to vector<16x16xf32>
      %228 = arith.subf %224, %227 : vector<16x16xf32>
      %229 = math.exp %228 : vector<16x16xf32>
      %cst_112 = arith.constant dense<0.000000e+00> : vector<16xf32>
      %230 = vector.multi_reduction <add>, %229, %cst_112 [1] : vector<16x16xf32> to vector<16xf32>
      %231 = vector.shape_cast %230 : vector<16xf32> to vector<16x1xf32>
      %232 = arith.truncf %229 : vector<16x16xf32> to vector<16x16xbf16>
      %cst_113 = arith.constant dense<0.000000e+00> : vector<16x8xf32>
      %233 = tpu.matmul %232, %223, %cst_113 {dimension_numbers = #tpu.dot_dimension_numbers<[1], [0], [0], [1], [0, 0, 1, 1], [], []>} : vector<16x16xbf16>, vector<16x8xbf16>, vector<16x8xf32> -> vector<16x8xf32>
      %234 = tpu.reciprocal %231 {approx = true} : vector<16x1xf32> -> vector<16x1xf32>
      %235 = vector.broadcast %234 : vector<16x1xf32> to vector<16x8xf32>
      %236 = arith.mulf %233, %235 : vector<16x8xf32>
      %237 = arith.truncf %236 : vector<16x8xf32> to vector<16x8xbf16>
      %238 = vector.extract_strided_slice %95 {offsets = [0, 0], sizes = [8, 32], strides = [1, 1]} : vector<32x32xbf16> to vector<8x32xbf16>
      %cst_114 = arith.constant dense<0.000000e+00> : vector<16x32xf32>
      %239 = tpu.matmul %237, %238, %cst_114 {dimension_numbers = #tpu.dot_dimension_numbers<[1], [0], [0], [1], [0, 0, 1, 1], [], []>} : vector<16x8xbf16>, vector<8x32xbf16>, vector<16x32xf32> -> vector<16x32xf32>
      %240 = arith.addf %220, %239 : vector<16x32xf32>
      %241 = vector.extract_strided_slice %91 {offsets = [16, 8], sizes = [16, 8], strides = [1, 1]} : vector<32x32xbf16> to vector<16x8xbf16>
      %242 = vector.extract_strided_slice %92 {offsets = [16, 8], sizes = [16, 8], strides = [1, 1]} : vector<32x32xbf16> to vector<16x8xbf16>
      %243 = vector.extract_strided_slice %93 {offsets = [16, 8], sizes = [16, 8], strides = [1, 1]} : vector<32x32xbf16> to vector<16x8xbf16>
      %cst_115 = arith.constant dense<0.000000e+00> : vector<16x16xf32>
      %244 = tpu.matmul %241, %242, %cst_115 {dimension_numbers = #tpu.dot_dimension_numbers<[1], [1], [0], [0], [0, 0, 1, 0], [], []>} : vector<16x8xbf16>, vector<16x8xbf16>, vector<16x16xf32> -> vector<16x16xf32>
      %cst_116 = arith.constant dense<0xFF800000> : vector<16xf32>
      %245 = vector.multi_reduction <maximumf>, %244, %cst_116 [1] : vector<16x16xf32> to vector<16xf32>
      %246 = vector.shape_cast %245 : vector<16xf32> to vector<16x1xf32>
      %247 = vector.broadcast %246 : vector<16x1xf32> to vector<16x16xf32>
      %248 = arith.subf %244, %247 : vector<16x16xf32>
      %249 = math.exp %248 : vector<16x16xf32>
      %cst_117 = arith.constant dense<0.000000e+00> : vector<16xf32>
      %250 = vector.multi_reduction <add>, %249, %cst_117 [1] : vector<16x16xf32> to vector<16xf32>
      %251 = vector.shape_cast %250 : vector<16xf32> to vector<16x1xf32>
      %252 = arith.truncf %249 : vector<16x16xf32> to vector<16x16xbf16>
      %cst_118 = arith.constant dense<0.000000e+00> : vector<16x8xf32>
      %253 = tpu.matmul %252, %243, %cst_118 {dimension_numbers = #tpu.dot_dimension_numbers<[1], [0], [0], [1], [0, 0, 1, 1], [], []>} : vector<16x16xbf16>, vector<16x8xbf16>, vector<16x8xf32> -> vector<16x8xf32>
      %254 = tpu.reciprocal %251 {approx = true} : vector<16x1xf32> -> vector<16x1xf32>
      %255 = vector.broadcast %254 : vector<16x1xf32> to vector<16x8xf32>
      %256 = arith.mulf %253, %255 : vector<16x8xf32>
      %257 = arith.truncf %256 : vector<16x8xf32> to vector<16x8xbf16>
      %258 = vector.extract_strided_slice %95 {offsets = [8, 0], sizes = [8, 32], strides = [1, 1]} : vector<32x32xbf16> to vector<8x32xbf16>
      %cst_119 = arith.constant dense<0.000000e+00> : vector<16x32xf32>
      %259 = tpu.matmul %257, %258, %cst_119 {dimension_numbers = #tpu.dot_dimension_numbers<[1], [0], [0], [1], [0, 0, 1, 1], [], []>} : vector<16x8xbf16>, vector<8x32xbf16>, vector<16x32xf32> -> vector<16x32xf32>
      %260 = arith.addf %240, %259 : vector<16x32xf32>
      %261 = vector.extract_strided_slice %91 {offsets = [16, 16], sizes = [16, 8], strides = [1, 1]} : vector<32x32xbf16> to vector<16x8xbf16>
      %262 = vector.extract_strided_slice %92 {offsets = [16, 16], sizes = [16, 8], strides = [1, 1]} : vector<32x32xbf16> to vector<16x8xbf16>
      %263 = vector.extract_strided_slice %93 {offsets = [16, 16], sizes = [16, 8], strides = [1, 1]} : vector<32x32xbf16> to vector<16x8xbf16>
      %cst_120 = arith.constant dense<0.000000e+00> : vector<16x16xf32>
      %264 = tpu.matmul %261, %262, %cst_120 {dimension_numbers = #tpu.dot_dimension_numbers<[1], [1], [0], [0], [0, 0, 1, 0], [], []>} : vector<16x8xbf16>, vector<16x8xbf16>, vector<16x16xf32> -> vector<16x16xf32>
      %cst_121 = arith.constant dense<0xFF800000> : vector<16xf32>
      %265 = vector.multi_reduction <maximumf>, %264, %cst_121 [1] : vector<16x16xf32> to vector<16xf32>
      %266 = vector.shape_cast %265 : vector<16xf32> to vector<16x1xf32>
      %267 = vector.broadcast %266 : vector<16x1xf32> to vector<16x16xf32>
      %268 = arith.subf %264, %267 : vector<16x16xf32>
      %269 = math.exp %268 : vector<16x16xf32>
      %cst_122 = arith.constant dense<0.000000e+00> : vector<16xf32>
      %270 = vector.multi_reduction <add>, %269, %cst_122 [1] : vector<16x16xf32> to vector<16xf32>
      %271 = vector.shape_cast %270 : vector<16xf32> to vector<16x1xf32>
      %272 = arith.truncf %269 : vector<16x16xf32> to vector<16x16xbf16>
      %cst_123 = arith.constant dense<0.000000e+00> : vector<16x8xf32>
      %273 = tpu.matmul %272, %263, %cst_123 {dimension_numbers = #tpu.dot_dimension_numbers<[1], [0], [0], [1], [0, 0, 1, 1], [], []>} : vector<16x16xbf16>, vector<16x8xbf16>, vector<16x8xf32> -> vector<16x8xf32>
      %274 = tpu.reciprocal %271 {approx = true} : vector<16x1xf32> -> vector<16x1xf32>
      %275 = vector.broadcast %274 : vector<16x1xf32> to vector<16x8xf32>
      %276 = arith.mulf %273, %275 : vector<16x8xf32>
      %277 = arith.truncf %276 : vector<16x8xf32> to vector<16x8xbf16>
      %278 = vector.extract_strided_slice %95 {offsets = [16, 0], sizes = [8, 32], strides = [1, 1]} : vector<32x32xbf16> to vector<8x32xbf16>
      %cst_124 = arith.constant dense<0.000000e+00> : vector<16x32xf32>
      %279 = tpu.matmul %277, %278, %cst_124 {dimension_numbers = #tpu.dot_dimension_numbers<[1], [0], [0], [1], [0, 0, 1, 1], [], []>} : vector<16x8xbf16>, vector<8x32xbf16>, vector<16x32xf32> -> vector<16x32xf32>
      %280 = arith.addf %260, %279 : vector<16x32xf32>
      %281 = vector.extract_strided_slice %91 {offsets = [16, 24], sizes = [16, 8], strides = [1, 1]} : vector<32x32xbf16> to vector<16x8xbf16>
      %282 = vector.extract_strided_slice %92 {offsets = [16, 24], sizes = [16, 8], strides = [1, 1]} : vector<32x32xbf16> to vector<16x8xbf16>
      %283 = vector.extract_strided_slice %93 {offsets = [16, 24], sizes = [16, 8], strides = [1, 1]} : vector<32x32xbf16> to vector<16x8xbf16>
      %cst_125 = arith.constant dense<0.000000e+00> : vector<16x16xf32>
      %284 = tpu.matmul %281, %282, %cst_125 {dimension_numbers = #tpu.dot_dimension_numbers<[1], [1], [0], [0], [0, 0, 1, 0], [], []>} : vector<16x8xbf16>, vector<16x8xbf16>, vector<16x16xf32> -> vector<16x16xf32>
      %cst_126 = arith.constant dense<0xFF800000> : vector<16xf32>
      %285 = vector.multi_reduction <maximumf>, %284, %cst_126 [1] : vector<16x16xf32> to vector<16xf32>
      %286 = vector.shape_cast %285 : vector<16xf32> to vector<16x1xf32>
      %287 = vector.broadcast %286 : vector<16x1xf32> to vector<16x16xf32>
      %288 = arith.subf %284, %287 : vector<16x16xf32>
      %289 = math.exp %288 : vector<16x16xf32>
      %cst_127 = arith.constant dense<0.000000e+00> : vector<16xf32>
      %290 = vector.multi_reduction <add>, %289, %cst_127 [1] : vector<16x16xf32> to vector<16xf32>
      %291 = vector.shape_cast %290 : vector<16xf32> to vector<16x1xf32>
      %292 = arith.truncf %289 : vector<16x16xf32> to vector<16x16xbf16>
      %cst_128 = arith.constant dense<0.000000e+00> : vector<16x8xf32>
      %293 = tpu.matmul %292, %283, %cst_128 {dimension_numbers = #tpu.dot_dimension_numbers<[1], [0], [0], [1], [0, 0, 1, 1], [], []>} : vector<16x16xbf16>, vector<16x8xbf16>, vector<16x8xf32> -> vector<16x8xf32>
      %294 = tpu.reciprocal %291 {approx = true} : vector<16x1xf32> -> vector<16x1xf32>
      %295 = vector.broadcast %294 : vector<16x1xf32> to vector<16x8xf32>
      %296 = arith.mulf %293, %295 : vector<16x8xf32>
      %297 = arith.truncf %296 : vector<16x8xf32> to vector<16x8xbf16>
      %298 = vector.extract_strided_slice %95 {offsets = [24, 0], sizes = [8, 32], strides = [1, 1]} : vector<32x32xbf16> to vector<8x32xbf16>
      %cst_129 = arith.constant dense<0.000000e+00> : vector<16x32xf32>
      %299 = tpu.matmul %297, %298, %cst_129 {dimension_numbers = #tpu.dot_dimension_numbers<[1], [0], [0], [1], [0, 0, 1, 1], [], []>} : vector<16x8xbf16>, vector<8x32xbf16>, vector<16x32xf32> -> vector<16x32xf32>
      %300 = arith.addf %280, %299 : vector<16x32xf32>
      %301 = vector.extract_strided_slice %38 {offsets = [16, 0], sizes = [16, 32], strides = [1, 1]} : vector<32x32xf32> to vector<16x32xf32>
      %302 = arith.addf %301, %300 : vector<16x32xf32>
      %c0_130 = arith.constant 0 : index
      %c0_131 = arith.constant 0 : index
      %c0_132 = arith.constant 0 : index
      %303 = vector.load %arg13[%c0_130, %c0_131, %c0_132] : memref<1x1x32xf32, #tpu.memory_space<vmem>>, vector<1x1x32xf32>
      %304 = vector.shape_cast %303 : vector<1x1x32xf32> to vector<1x32xf32>
      %305 = vector.broadcast %304 : vector<1x32xf32> to vector<16x32xf32>
      %306 = arith.addf %302, %305 : vector<16x32xf32>
      %c0_133 = arith.constant 0 : index
      %c0_134 = arith.constant 0 : index
      %c0_135 = arith.constant 0 : index
      %307 = vector.load %arg14[%c0_133, %c0_134, %c0_135] : memref<1x1x32xf32, #tpu.memory_space<vmem>>, vector<1x1x32xf32>
      %308 = vector.shape_cast %307 : vector<1x1x32xf32> to vector<1x32xf32>
      %c0_136 = arith.constant 0 : index
      %c0_137 = arith.constant 0 : index
      %c0_138 = arith.constant 0 : index
      %309 = vector.load %arg15[%c0_136, %c0_137, %c0_138] : memref<1x1x32xf32, #tpu.memory_space<vmem>>, vector<1x1x32xf32>
      %310 = vector.shape_cast %309 : vector<1x1x32xf32> to vector<1x32xf32>
      %cst_139 = arith.constant dense<0.000000e+00> : vector<16xf32>
      %311 = vector.multi_reduction <add>, %306, %cst_139 [1] : vector<16x32xf32> to vector<16xf32>
      %312 = vector.shape_cast %311 : vector<16xf32> to vector<16x1xf32>
      %cst_140 = arith.constant 3.200000e+01 : f32
      %313 = vector.broadcast %cst_140 : f32 to vector<16x1xf32>
      %314 = arith.divf %312, %313 : vector<16x1xf32>
      %315 = arith.mulf %306, %306 : vector<16x32xf32>
      %cst_141 = arith.constant dense<0.000000e+00> : vector<16xf32>
      %316 = vector.multi_reduction <add>, %315, %cst_141 [1] : vector<16x32xf32> to vector<16xf32>
      %317 = vector.shape_cast %316 : vector<16xf32> to vector<16x1xf32>
      %cst_142 = arith.constant 3.200000e+01 : f32
      %318 = vector.broadcast %cst_142 : f32 to vector<16x1xf32>
      %319 = arith.divf %317, %318 : vector<16x1xf32>
      %320 = arith.mulf %314, %314 : vector<16x1xf32>
      %321 = arith.subf %319, %320 : vector<16x1xf32>
      %cst_143 = arith.constant 0.000000e+00 : f32
      %322 = vector.broadcast %cst_143 : f32 to vector<16x1xf32>
      %323 = arith.maximumf %321, %322 : vector<16x1xf32>
      %324 = vector.broadcast %314 : vector<16x1xf32> to vector<16x32xf32>
      %325 = arith.subf %306, %324 : vector<16x32xf32>
      %cst_144 = arith.constant 9.99999997E-7 : f32
      %326 = vector.broadcast %cst_144 : f32 to vector<16x1xf32>
      %327 = arith.addf %323, %326 : vector<16x1xf32>
      %328 = math.rsqrt %327 : vector<16x1xf32>
      %329 = vector.broadcast %328 : vector<16x1xf32> to vector<16x32xf32>
      %330 = arith.mulf %325, %329 : vector<16x32xf32>
      %331 = vector.broadcast %308 : vector<1x32xf32> to vector<16x32xf32>
      %332 = arith.mulf %330, %331 : vector<16x32xf32>
      %333 = vector.broadcast %310 : vector<1x32xf32> to vector<16x32xf32>
      %334 = arith.addf %332, %333 : vector<16x32xf32>
      %335 = arith.truncf %334 : vector<16x32xf32> to vector<16x32xbf16>
      %c16 = arith.constant 16 : index
      %c0_145 = arith.constant 0 : index
      %336 = vector.load %arg21[%c16, %c0_145] : memref<32x32xbf16, #tpu.memory_space<vmem>>, vector<16x32xbf16>
      tpu.vector_store %arg21[%c16, %c0_145], %335 {strides = array<i32>} : memref<32x32xbf16, #tpu.memory_space<vmem>>, vector<16x32xbf16>,
      %c0_146 = arith.constant 0 : index
      %c0_147 = arith.constant 0 : index
      %c0_148 = arith.constant 0 : index
      %337 = vector.load %arg19[%c0_146, %c0_147, %c0_148] : memref<1x1x32xf32, #tpu.memory_space<vmem>>, vector<1x1x32xf32>
      %338 = vector.shape_cast %337 : vector<1x1x32xf32> to vector<1x32xf32>
      %339 = vector.broadcast %338 : vector<1x32xf32> to vector<16x32xf32>
      %340 = arith.addf %306, %339 : vector<16x32xf32>
      %c1 = arith.constant 1 : index
      %c0_149 = arith.constant 0 : index
      %c0_150 = arith.constant 0 : index
      %341 = vector.load %arg20[%c1, %c0_149, %c0_150] : memref<2x16x32xf32, #tpu.memory_space<vmem>>, vector<1x16x32xf32>
      %342 = vector.shape_cast %341 : vector<1x16x32xf32> to vector<16x32xf32>
      %343 = vector.shape_cast %340 : vector<16x32xf32> to vector<1x16x32xf32>
      tpu.vector_store %arg20[%c1, %c0_149, %c0_150], %343 {strides = array<i32>} : memref<2x16x32xf32, #tpu.memory_space<vmem>>, vector<1x16x32xf32>,
    } else {
    }
    %c0 = arith.constant 0 : index
    %c0_4 = arith.constant 0 : index
    %8 = vector.load %arg21[%c0, %c0_4] : memref<32x32xbf16, #tpu.memory_space<vmem>>, vector<32x32xbf16>
    %c0_5 = arith.constant 0 : index
    %c0_6 = arith.constant 0 : index
    %c0_7 = arith.constant 0 : index
    %9 = vector.load %arg16[%c0_5, %c0_6, %c0_7] : memref<1x32x128xbf16, #tpu.memory_space<vmem>>, vector<1x32x128xbf16>
    %10 = vector.shape_cast %9 : vector<1x32x128xbf16> to vector<32x128xbf16>
    %cst = arith.constant dense<0.000000e+00> : vector<32x128xf32>
    %11 = tpu.matmul %8, %10, %cst {dimension_numbers = #tpu.dot_dimension_numbers<[1], [0], [0], [1], [0, 0, 1, 1], [], []>} : vector<32x32xbf16>, vector<32x128xbf16>, vector<32x128xf32> -> vector<32x128xf32>
    %c0_8 = arith.constant 0 : index
    %c0_9 = arith.constant 0 : index
    %c0_10 = arith.constant 0 : index
    %12 = vector.load %arg17[%c0_8, %c0_9, %c0_10] : memref<1x1x128xf32, #tpu.memory_space<vmem>>, vector<1x1x128xf32>
    %13 = vector.shape_cast %12 : vector<1x1x128xf32> to vector<1x128xf32>
    %14 = vector.broadcast %13 : vector<1x128xf32> to vector<32x128xf32>
    %15 = arith.addf %11, %14 : vector<32x128xf32>
    %cst_11 = arith.constant 5.000000e-01 : f32
    %16 = vector.broadcast %cst_11 : f32 to vector<32x128xf32>
    %17 = arith.mulf %16, %15 : vector<32x128xf32>
    %cst_12 = arith.constant 4.471500e-02 : f32
    %18 = vector.broadcast %cst_12 : f32 to vector<32x128xf32>
    %19 = arith.mulf %18, %15 : vector<32x128xf32>
    %20 = arith.mulf %19, %15 : vector<32x128xf32>
    %21 = arith.mulf %20, %15 : vector<32x128xf32>
    %22 = arith.addf %15, %21 : vector<32x128xf32>
    %cst_13 = arith.constant 0.797884583 : f32
    %23 = vector.broadcast %cst_13 : f32 to vector<32x128xf32>
    %24 = arith.mulf %23, %22 : vector<32x128xf32>
    %25 = math.tanh %24 : vector<32x128xf32>
    %cst_14 = arith.constant 1.000000e+00 : f32
    %26 = vector.broadcast %cst_14 : f32 to vector<32x128xf32>
    %27 = arith.addf %26, %25 : vector<32x128xf32>
    %28 = arith.mulf %17, %27 : vector<32x128xf32>
    %29 = arith.truncf %28 : vector<32x128xf32> to vector<32x128xbf16>
    %c0_15 = arith.constant 0 : index
    %c0_16 = arith.constant 0 : index
    %c0_17 = arith.constant 0 : index
    %30 = vector.load %arg18[%c0_15, %c0_16, %c0_17] : memref<1x128x32xbf16, #tpu.memory_space<vmem>>, vector<1x128x32xbf16>
    %31 = vector.shape_cast %30 : vector<1x128x32xbf16> to vector<128x32xbf16>
    %cst_18 = arith.constant dense<0.000000e+00> : vector<32x32xf32>
    %32 = tpu.matmul %29, %31, %cst_18 {dimension_numbers = #tpu.dot_dimension_numbers<[1], [0], [0], [1], [0, 0, 1, 1], [], []>} : vector<32x128xbf16>, vector<128x32xbf16>, vector<32x32xf32> -> vector<32x32xf32>
    %c0_19 = arith.constant 0 : index
    %c0_20 = arith.constant 0 : index
    %c0_21 = arith.constant 0 : index
    %33 = vector.load %arg20[%c0_19, %c0_20, %c0_21] : memref<2x16x32xf32, #tpu.memory_space<vmem>>, vector<2x16x32xf32>
    %34 = vector.shape_cast %32 : vector<32x32xf32> to vector<2x16x32xf32>
    %35 = arith.addf %33, %34 : vector<2x16x32xf32>
    %c0_22 = arith.constant 0 : index
    %c0_23 = arith.constant 0 : index
    %c0_24 = arith.constant 0 : index
    %36 = vector.load %arg20[%c0_22, %c0_23, %c0_24] : memref<2x16x32xf32, #tpu.memory_space<vmem>>, vector<2x16x32xf32>
    tpu.vector_store %arg20[%c0_22, %c0_23, %c0_24], %35 {strides = array<i32>} : memref<2x16x32xf32, #tpu.memory_space<vmem>>, vector<2x16x32xf32>,
    return
  }
  func.func @transform_0(%arg0: i32, %arg1: i32, %arg2: i32) -> (i32, i32, i32) {
    %c0_i32 = arith.constant 0 : i32
    %c0_i32_0 = arith.constant 0 : i32
    %c0_i32_1 = arith.constant 0 : i32
    return %arg0, %c0_i32, %c0_i32_0 : i32, i32, i32
  }
  func.func @transform_1(%arg0: i32, %arg1: i32, %arg2: i32) -> (i32, i32, i32) {
    %c0_i32 = arith.constant 0 : i32
    %c0_i32_0 = arith.constant 0 : i32
    %c0_i32_1 = arith.constant 0 : i32
    return %arg1, %c0_i32, %c0_i32_0 : i32, i32, i32
  }
  func.func @transform_2(%arg0: i32, %arg1: i32, %arg2: i32) -> (i32, i32, i32) {
    %c0_i32 = arith.constant 0 : i32
    %c0_i32_0 = arith.constant 0 : i32
    %c0_i32_1 = arith.constant 0 : i32
    return %arg1, %c0_i32, %c0_i32_0 : i32, i32, i32
  }
  func.func @transform_3(%arg0: i32, %arg1: i32, %arg2: i32) -> (i32, i32, i32) {
    %c0_i32 = arith.constant 0 : i32
    %c0_i32_0 = arith.constant 0 : i32
    %c0_i32_1 = arith.constant 0 : i32
    return %arg1, %c0_i32, %c0_i32_0 : i32, i32, i32
  }
  func.func @transform_4(%arg0: i32, %arg1: i32, %arg2: i32) -> (i32, i32, i32) {
    %c0_i32 = arith.constant 0 : i32
    %c0_i32_0 = arith.constant 0 : i32
    %c0_i32_1 = arith.constant 0 : i32
    return %arg1, %c0_i32, %c0_i32_0 : i32, i32, i32
  }
  func.func @transform_5(%arg0: i32, %arg1: i32, %arg2: i32) -> (i32, i32, i32) {
    %c0_i32 = arith.constant 0 : i32
    %c0_i32_0 = arith.constant 0 : i32
    %c0_i32_1 = arith.constant 0 : i32
    return %arg1, %c0_i32, %c0_i32_0 : i32, i32, i32
  }
  func.func @transform_6(%arg0: i32, %arg1: i32, %arg2: i32) -> (i32, i32, i32) {
    %c0_i32 = arith.constant 0 : i32
    %c0_i32_0 = arith.constant 0 : i32
    %c0_i32_1 = arith.constant 0 : i32
    return %arg1, %c0_i32, %c0_i32_0 : i32, i32, i32
  }
  func.func @transform_7(%arg0: i32, %arg1: i32, %arg2: i32) -> (i32, i32, i32) {
    %c0_i32 = arith.constant 0 : i32
    %c0_i32_0 = arith.constant 0 : i32
    %c0_i32_1 = arith.constant 0 : i32
    return %arg1, %c0_i32, %c0_i32_0 : i32, i32, i32
  }
  func.func @transform_8(%arg0: i32, %arg1: i32, %arg2: i32) -> (i32, i32, i32) {
    %c0_i32 = arith.constant 0 : i32
    %c0_i32_0 = arith.constant 0 : i32
    %c0_i32_1 = arith.constant 0 : i32
    return %arg1, %c0_i32, %c0_i32_0 : i32, i32, i32
  }
  func.func @transform_9(%arg0: i32, %arg1: i32, %arg2: i32) -> (i32, i32, i32) {
    %c0_i32 = arith.constant 0 : i32
    %c0_i32_0 = arith.constant 0 : i32
    %c0_i32_1 = arith.constant 0 : i32
    return %arg1, %c0_i32, %c0_i32_0 : i32, i32, i32
  }
  func.func @transform_10(%arg0: i32, %arg1: i32, %arg2: i32) -> (i32, i32, i32) {
    %c0_i32 = arith.constant 0 : i32
    %c0_i32_0 = arith.constant 0 : i32
    %c0_i32_1 = arith.constant 0 : i32
    return %arg1, %c0_i32, %c0_i32_0 : i32, i32, i32
  }
  func.func @transform_11(%arg0: i32, %arg1: i32, %arg2: i32) -> (i32, i32, i32) {
    %c0_i32 = arith.constant 0 : i32
    %c0_i32_0 = arith.constant 0 : i32
    %c0_i32_1 = arith.constant 0 : i32
    return %arg1, %c0_i32, %c0_i32_0 : i32, i32, i32
  }
  func.func @transform_12(%arg0: i32, %arg1: i32, %arg2: i32) -> (i32, i32, i32) {
    %c0_i32 = arith.constant 0 : i32
    %c0_i32_0 = arith.constant 0 : i32
    %c0_i32_1 = arith.constant 0 : i32
    return %arg1, %c0_i32, %c0_i32_0 : i32, i32, i32
  }
  func.func @transform_13(%arg0: i32, %arg1: i32, %arg2: i32) -> (i32, i32, i32) {
    %c0_i32 = arith.constant 0 : i32
    %c0_i32_0 = arith.constant 0 : i32
    return %arg1, %c0_i32, %arg2 : i32, i32, i32
  }
  func.func @transform_14(%arg0: i32, %arg1: i32, %arg2: i32) -> (i32, i32, i32) {
    %c0_i32 = arith.constant 0 : i32
    %c0_i32_0 = arith.constant 0 : i32
    return %arg1, %c0_i32, %arg2 : i32, i32, i32
  }
  func.func @transform_15(%arg0: i32, %arg1: i32, %arg2: i32) -> (i32, i32, i32) {
    %c0_i32 = arith.constant 0 : i32
    %c0_i32_0 = arith.constant 0 : i32
    return %arg1, %arg2, %c0_i32 : i32, i32, i32
  }
  func.func @transform_16(%arg0: i32, %arg1: i32, %arg2: i32) -> (i32, i32, i32) {
    %c0_i32 = arith.constant 0 : i32
    %c0_i32_0 = arith.constant 0 : i32
    %c0_i32_1 = arith.constant 0 : i32
    return %arg1, %c0_i32, %c0_i32_0 : i32, i32, i32
  }
  func.func @transform_17(%arg0: i32, %arg1: i32, %arg2: i32) -> (i32, i32, i32) {
    %c0_i32 = arith.constant 0 : i32
    %c0_i32_0 = arith.constant 0 : i32
    %c0_i32_1 = arith.constant 0 : i32
    return %arg0, %c0_i32, %c0_i32_0 : i32, i32, i32
  }
}

</mosaic_0001>

<bundles_post_ra>
// kernel: tpu_custom_call.1
= control target key start
LH: loop header
LB: loop body
LE: loop exit
PB: predicated region body
PF: predicated region fallthrough
CT: control target
= control target key end

     0   :  { %s4857_s0 = inlined_call_operand.vmem [shape: f32[4,16,32], index: 0, kind: input, shape index: {}]   ;;  %s4858_s1 = inlined_call_operand.vmem [shape: f32[2,1,32], index: 1, kind: input, shape index: {}]   ;;  %s4859_s2 = inlined_call_operand.vmem [shape: f32[2,1,32], index: 2, kind: input, shape index: {}]   ;;  %s4860_s3 = inlined_call_operand.vmem [shape: bf16[2,32,32], index: 3, kind: input, shape index: {}]   ;;  %s4861_s4 = inlined_call_operand.vmem [shape: f32[2,1,32], index: 4, kind: input, shape index: {}]   ;;  %s4862_s5 = inlined_call_operand.vmem [shape: bf16[2,32,32], index: 5, kind: input, shape index: {}]   ;;  %s4863_s6 = inlined_call_operand.vmem [shape: f32[2,1,32], index: 6, kind: input, shape index: {}]   ;;  %s4864_s7 = inlined_call_operand.vmem [shape: bf16[2,32,32], index: 7, kind: input, shape index: {}]   ;;  %s4865_s8 = inlined_call_operand.vmem [shape: f32[2,1,32], index: 8, kind: input, shape index: {}]   ;;  %s4866_s9 = inlined_call_operand.vmem [shape: bf16[2,32,32], index: 9, kind: input, shape index: {}]   ;;  %s4867_s10 = inlined_call_operand.vmem [shape: f32[2,1,32], index: 10, kind: input, shape index: {}]   ;;  %s4868_s11 = inlined_call_operand.vmem [shape: f32[2,1,32], index: 11, kind: input, shape index: {}]   ;;  %s4869_s12 = inlined_call_operand.vmem [shape: f32[2,1,32], index: 12, kind: input, shape index: {}]   ;;  %s4870_s13 = inlined_call_operand.vmem [shape: bf16[2,32,256], index: 13, kind: input, shape index: {}]   ;;  %s4871_s14 = inlined_call_operand.vmem [shape: f32[2,1,256], index: 14, kind: input, shape index: {}]   ;;  %s4872_s15 = inlined_call_operand.vmem [shape: bf16[2,256,32], index: 15, kind: input, shape index: {}]   ;;  %s4873_s16 = inlined_call_operand.vmem [shape: f32[2,1,32], index: 16, kind: input, shape index: {}]   ;;  %s4874_s17 = inlined_call_operand.hbm [shape: f32[4,16,32], index: 17, kind: output, shape index: {}]  }
   0x1   :  { %4893 = sst [smem:[#allocation23_spill]] %s4857_s0 }
   0x2   :  { %4894 = sst [smem:[#allocation24_spill]] %s4858_s1 }
   0x3   :  { %4895 = sst [smem:[#allocation25_spill]] %s4860_s3 }
   0x4   :  { %4896 = sst [smem:[#allocation26_spill]] %s4861_s4 }
   0x5   :  { %4897 = sst [smem:[#allocation27_spill]] %s4862_s5 }
   0x6   :  { %4898 = sst [smem:[#allocation28_spill]] %s4863_s6 }
   0x7   :  { %4899 = sst [smem:[#allocation29_spill]] %s4864_s7 }
   0x8   :  { %4900 = sst [smem:[#allocation30_spill]] %s4865_s8 }
   0x9   :  { %4901 = sst [smem:[#allocation31_spill]] %s4866_s9 }
   0xa   :  { %4902 = sst [smem:[#allocation32_spill]] %s4867_s10 }
   0xb   :  { %4903 = sst [smem:[#allocation33_spill]] %s4868_s11 }
   0xc   :  { %4904 = sst [smem:[#allocation34_spill]] %s4869_s12 }
   0xd   :  { %4905 = sst [smem:[#allocation35_spill]] %s4870_s13 }
   0xe   :  { %4906 = sst [smem:[#allocation36_spill]] %s4871_s14 }
   0xf   :  { %4907 = sst [smem:[#allocation37_spill]] %s4872_s15 }
  0x10   :  { %4908 = sst [smem:[#allocation38_spill]] %s4873_s16 }
  0x11   :  { %4909 = sst [smem:[#allocation39_spill]] %s4874_s17 }
  0x12   :  { %22 = vsyncpa [#allocation5], 0 }
  0x13   :  { %24 = vsyncpa [#allocation5 + $0x1], 0  ;;  %s4136_s24 = smov 0   ;;  %s4138_s25 = smov 0  }
  0x14   :  { %s4140_s26 = smov 0   ;;  %s4142_s27 = smov 0  }
  0x15   :  { %s4144_s28 = smov 0   ;;  %s4146_s29 = smov 0  }
  0x16   :  { %s4148_s0 = smov 0   ;;  %s4150_s30 = smov 0  }
  0x17   :  { %s4152_s18 = smov 0   ;;  %s4154_s19 = smov 0  }
  0x18   :  { %s4156_s1 = smov 0   ;;  %s4158_s20 = smov 0  }
  0x19 LB: > { %4910 = sst [smem:[#allocation7_spill]] %s3992_s24  ;;  %s3311_s21 = sadd.s32 4294967295, %s4036_s20   ;;  %s4036_s20 = sphi %s4158_s20, %s30_s20   ;;  %s4032_s1 = sphi %s4156_s1, %s4979_s1   ;;  %s4028_s19 = sphi %s4154_s19, %s4978_s19   ;;  %s4024_s18 = sphi %s4152_s18, %s4977_s18   ;;  %s4020_s30 = sphi %s4150_s30, %s4976_s30   ;;  %s4016_s0 = sphi %s4148_s0, %s4975_s0   ;;  %s4012_s29 = sphi %s4146_s29, %s4974_s29   ;;  %s4008_s28 = sphi %s4144_s28, %s4973_s28   ;;  %s4004_s27 = sphi %s4142_s27, %s4972_s27   ;;  %s4000_s26 = sphi %s4140_s26, %s4971_s26   ;;  %s3996_s25 = sphi %s4138_s25, %s4970_s25   ;;  %s3992_s24 = sphi %s4136_s24, %s4969_s24  }
  0x1a   : > { %4911 = sst [smem:[#allocation8_spill]] %s3996_s25  ;;  %s3312_s22 = sadd.s32 4294967294, %s4036_s20  }
  0x1b   : > { %4912 = sst [smem:[#allocation9_spill]] %s4000_s26  ;;  %s42_s23 = sadd.s32 1, %s4024_s18 }
  0x1c   : > { %4913 = sst [smem:[#allocation10_spill]] %s4008_s28  ;;  %s45_s17 = sadd.s32 1, %s4028_s19 }
  0x1d   : > { %4914 = sst [smem:[#allocation11_spill]] %s4020_s30  ;;  %p43_p0 = scmp.ge.s32.totalorder %s42_s23, 2 }
  0x1e   : > { %4915 = sst [smem:[#allocation12_spill]] %s4024_s18  ;;  %s49_s15 = sadd.s32 1, %s4032_s1 }
  0x1f   : > { %4916 = sst [smem:[#allocation13_spill]] %s4028_s19  ;;  %s396_s16 = sadd.s32 1, %s4008_s28 }
  0x20   : > { %4917 = sst [smem:[#allocation14_spill]] %s4032_s1  ;;  %p403_p1 = scmp.ne.s32.totalorder %s4008_s28, %s4004_s27 }
  0x21   : > { %4918 = sst [smem:[#allocation15_spill]] %s4036_s20  ;;  %s4981_s23 = smov (%p43_p0, %s42_s23), 0 }
  0x22   : > { %4919 = sst [smem:[#allocation16_spill]] %s4981_s23  ;;  %s4983_s17 = smov (!%p43_p0, %s45_s17), %s4028_s19 }
  0x23   : > { %s392_s14 = ssub.s32 %s4024_s18, %s4981_s23  ;;  %p404_p2 = scmp.eq.s32.totalorder %s4036_s20, 0 }
  0x24   : > { %p47_p3 = scmp.ge.s32.totalorder %s4983_s17, 2  ;;  %s504_s12 = sadd.s32 1, %s4000_s26 }
  0x25   : > { %p4211_p4 = por %p404_p2, %p403_p1  ;;  %p514_p5 = scmp.ne.s32.totalorder %s4000_s26, %s3996_s25 }
  0x26   : > { %s4985_s17 = smov (%p47_p3, %s4983_s17), 0  ;;  %s4987_s15 = smov (!%p47_p3, %s49_s15), %s4032_s1 }
  0x27   : > { %4921 = sst [smem:[#allocation17_spill]] %s4985_s17  ;;  %s391_s10 = ssub.s32 %s4028_s19, %s4985_s17 }
  0x28   : > { %p515_p6 = scmp.eq.s32.totalorder %s3311_s21, 7  ;;  %p51_p7 = scmp.ge.s32.totalorder %s4987_s15, 2 }
  0x29   : > { %s393_s23 = sor.u32 %s392_s14, %s391_s10  ;;  %p520_p10 = scmp.ne.s32.totalorder %s3996_s25, %s3992_s24 }
  0x2a   : > { %p394_p8 = scmp.eq.s32.totalorder %s393_s23, 0  ;;  %p4222_p9 = por %p515_p6, %p514_p5 }
  0x2b   : > { %s4989_s15 = smov (%p51_p7, %s4987_s15), 0  ;;  %p521_p12 = scmp.eq.s32.totalorder %s3312_s22, 7 }
  0x2c   : > { %s4922_s9 = scalar_select %p4222_p9, 1, 0 }
  0x2d   : > { %4924 = sst [smem:[#allocation19_spill]] %s4989_s15  ;;  %s501_s7 = ssub.s32 %s4032_s1, %s4989_s15 }
  0x2e   : > { %4923 = sst [smem:[#allocation18_spill]] %s4922_s9  ;;  %p502_p11 = scmp.eq.s32.totalorder %s501_s7, 0 }
  0x2f   : > { %s4229_s8 = scalar_select %p394_p8, %s4008_s28, %s396_s16  }
  0x30   : > { %s4236_s6 = scalar_select %p502_p11, %s4000_s26, %s504_s12  }
  0x31   : > { %4925 = sst [smem:[#allocation20_spill]] %s4229_s8  ;;  %p4238_p13 = por %p521_p12, %p520_p10 }
  0x32   : > { %4926 = sst [smem:[#allocation21_spill]] %s4236_s6  ;;  %p3314_p0 = scmp.ge.s32.totalorder %s4036_s20, 8 }
  0x33   : > { %s4927_s21 = scalar_select %p4238_p13, 1, 0 }
  0x34   : > { %537 = sbr.rel (%p3314_p0) target bundleno = 69 (0x45), region = 16 }
  0x35   : > { %4928 = sst [smem:[#allocation22_spill]] %s4927_s21 }
  0x39   : > { %630 = sbr.rel (!%p4211_p4) target bundleno = 69 (0x45), region = 72  ;;  %s632_s10 = sand.u32 (%p4211_p4), 1, %s4008_s28  }
  0x3a   : > { %s3316_s14 = sshll.u32 (%p4211_p4), %s4028_s19, 3  ;;  %s3315_s16 = sshll.u32 (%p4211_p4), %s632_s10, 4 }
  0x3b   : > { %s636_s7 = sadd.s32 (%p4211_p4), %s4024_s18, %s3316_s14  ;;  %s4929_s13 = sld [smem:[#allocation35_spill]] (%p4211_p4) }
  0x3c   : > { %s3317_s22 = sshll.u32 (%p4211_p4), %s636_s7, 2  ;;  %s634_s17 = scalar_lea.vmem (%p4211_p4), [#allocation3], %s3315_s16 }
  0x41   : > { %s638_s15 = scalar_lea.vmem %s4929_s13, %s3317_s22 }
  0x42   : > { %v655_v0 = vld [vmem:[%s638_s15] sm:$0xf]  ;;  %v657_v1 = vld [vmem:[%s638_s15 + $0x8] sm:$0xf]  ;;  %v659_v2 = vld [vmem:[%s638_s15 + $0x10] sm:$0xf] }
  0x43   : > { %656 = vst [vmem:[%s634_s17] sm:$0xf] %v655_v0  ;;  %658 = vst [vmem:[%s634_s17 + $0x4] sm:$0xf] %v657_v1  ;;  %v661_v3 = vld [vmem:[%s638_s15 + $0x18] sm:$0xf] }
  0x44   : > { %660 = vst [vmem:[%s634_s17 + $0x8] sm:$0xf] %v659_v2  ;;  %662 = vst [vmem:[%s634_s17 + $0xc] sm:$0xf] %v661_v3 }
  0x45 PF: > { %p3318_p1 = scmp.ge.s32.totalorder %s4036_s20, 1  ;;  %p722_p2 = scmp.lt.s32.totalorder %s4036_s20, 9 }
  0x47   : > { %p723_p3 = pnand %p3318_p1, %p722_p2 }
  0x48   : > { %s729_s11 = sand.u32 (!%p723_p3), 1, %s4004_s27   ;;  %s4879_s10 = sand.u32 (!%p723_p3), 1, %s3996_s25  }
  0x49   : > { %726 = sbr.rel (%p723_p3) target bundleno = 4241 (0x1091), region = 125  ;;  %s4255_s14 = sshll.u32 (!%p723_p3), %s729_s11, 4 }
  0x4a   : > { %s4259_s15 = sshll.u32 (!%p723_p3), %s4879_s10, 5  ;;  %s3321_s17 = sshll.u32 (!%p723_p3), %s4020_s30, 1 }
  0x4b   : > { %p856_p4 = scmp.lt.s32.totalorder (!%p723_p3), %s4016_s0, 1  ;;  %p850_p5 = scmp.lt.s32.totalorder (!%p723_p3), %s3321_s17, 3 }
  0x4c   : > { %p902_p6 = scmp.lt.s32.totalorder (!%p723_p3), %s4012_s29, 1  ;;  %s4931_s8 = sld [smem:[#allocation23_spill]] (!%p723_p3) }
  0x4d   : > { %s4932_s3 = sld [smem:[#allocation25_spill]] (!%p723_p3)  ;;  %s3333_s23 = sshll.u32 (!%p723_p3), %s4012_s29, 4 }
  0x4e   : > { %s4265_s16 = scalar_select %p856_p4, %s4016_s0, 1 }
  0x4f   : > { %s4991_s17 = smov (!%p850_p5, %s3321_s17), 3  ;;  %s4934_s5 = sld [smem:[#allocation27_spill]] }
  0x50   : > { %s3413_s13 = sshll.u32 %s4991_s17, 4  ;;  %s3414_s1 = sshll.u32 %s4265_s16, 4 }
  0x51   : > { %s4936_s24 = sld [smem:[#allocation29_spill]]  ;;  %p910_p7 = scmp.lt.s32.totalorder %s3333_s23, 31 }
  0x52   : > { %s4279_s28 = scalar_lea.vmem %s4931_s8, %s3413_s13  ;;  %s4937_s7 = sld [smem:[#allocation30_spill]] }
  0x53   : > { %s4284_s27 = scalar_lea.vmem %s4932_s3, %s3414_s1  ;;  %s4938_s11 = sld [smem:[#allocation31_spill]] }
  0x54   : > { %s3332_s3 = sshll.u32 %s4265_s16, 1  ;;  %s4942_s10 = sld [smem:[#allocation36_spill]] }
  0x55   : > { %s4293_s17 = scalar_lea.vmem %s4934_s5, %s3414_s1  ;;  %s4943_s18 = sld [smem:[#allocation38_spill]] }
  0x56   : > { %s903_s26 = scalar_select %p902_p6, %s4012_s29, 1 }
  0x57   : > { %s4302_s6 = scalar_lea.vmem %s4936_s24, %s3414_s1  ;;  %s4993_s23 = smov (!%p910_p7, %s3333_s23), 31 }
  0x58   : > { %s885_s22 = scalar_lea.vmem %s4937_s7, %s4265_s16  ;;  %s4331_s7 = sadd.s32 %s3332_s3, %s903_s26 }
  0x59   : > { %s4311_s5 = scalar_lea.vmem %s4938_s11, %s3414_s1  ;;  %s3334_s1 = sshll.u32 %s4265_s16, 5 }
  0x5a   : > { %s906_s8 = scalar_lea.vmem %s4942_s10, %s4331_s7  ;;  %p922_p8 = scmp.eq.s32.totalorder %s4016_s0, 0 }
  0x5b   : > { %s919_s25 = scalar_lea.vmem %s4943_s18, %s4265_s16  ;;  %p923_p10 = scmp.eq.s32.totalorder %s4012_s29, 0 }
  0x5c   : > { %s913_s30 = sadd.s32 %s3334_s1, %s4993_s23  ;;  %s4944_s3 = sld [smem:[#allocation37_spill]] }
  0x5d   : > { %s3335_s13 = sshll.u32 %s913_s30, 2  ;;  %p924_p11 = pnand %p923_p10, %p922_p8 }
  0x5e   : > { %s731_s19 = scalar_lea.vmem [#allocation3], %s4255_s14  ;;  %s4350_s12 = scalar_lea.vmem [#allocation4], %s4259_s15 }
  0x5f   : > { %927 = sbr.rel (%p924_p11) target bundleno = 103 (0x67), region = 133 }
  0x62   : > { %s4346_s26 = scalar_lea.vmem %s4944_s3, %s3335_s13 }
  0x64   : > { %v928_v4 = vld [vmem:[%s4279_s28] sm:$0xff]  ;;  %vm932_vm0 = vcmask 261120   ;;  %v929_v5 = vld [vmem:[%s4279_s28 + $0x8] sm:$0xff]  ;;  %v930_v6 = vld [vmem:[%s4279_s28 + $0x10] sm:$0xff] }
  0x65   : > { %933 = vst.msk [vmem:[%s4350_s12] sm:$0xff] %vm932_vm0, %v928_v4  ;;  %934 = vst.msk [vmem:[%s4350_s12 + $0x8] sm:$0xff] %vm932_vm0, %v929_v5  ;;  %v931_v7 = vld [vmem:[%s4279_s28 + $0x18] sm:$0xff] }
  0x66   : > { %935 = vst.msk [vmem:[%s4350_s12 + $0x10] sm:$0xff] %vm932_vm0, %v930_v6  ;;  %936 = vst.msk [vmem:[%s4350_s12 + $0x18] sm:$0xff] %vm932_vm0, %v931_v7 }
  0x67 PF: > { %p3336_p12 = scmp.ne.s32.totalorder %s4012_s29, 0 }
  0x68   : > { %s4945_s29 = sld [smem:[#allocation24_spill]] (!%p3336_p12)  ;;  %s4040_s24 = smov (!%p3336_p12), 120  }
  0x69   : > { %939 = sbr.rel (%p3336_p12) target bundleno = 3785 (0xec9), region = 137  ;;  %s4948_s1 = sld [smem:[#allocation26_spill]] (!%p3336_p12) }
  0x6a   : > { %s4950_s11 = sld [smem:[#allocation28_spill]] (!%p3336_p12)  ;;  %s4042_s3 = smov (!%p3336_p12), 104  }
  0x6b   : > { %s4953_s28 = sld [smem:[#allocation32_spill]] (!%p3336_p12) }
  0x6c   : > { %s4958_s20 = sld [smem:[#allocation34_spill]] (!%p3336_p12) }
  0x6e   : > { %v4362_v8 = vld [vmem:[%s4350_s12 + $0x10] sm:$0xff]  ;;  %vm946_vm1 = vcmask 261120   ;;  %v4365_v9 = vld [vmem:[%s4350_s12] sm:$0xff]  ;;  %v4368_v10 = vld [vmem:[%s4350_s12 + $0x18] sm:$0xff]  ;;  %s4946_s0 = scalar_lea.vmem %s4945_s29, %s4265_s16  ;;  %vm4039_vm2 = vmmov 0   ;;  %vm1270_vm3 = vcmask 64512  }
  0x6f   : > { %v953_v11 = vsel %vm946_vm1, %v4362_v8, 0.0  ;;  %v947_v12 = vsel %vm946_vm1, %v4365_v9, 0.0  ;;  %v4375_v13 = vld [vmem:[%s4350_s12 + $0x8] sm:$0xff]  ;;  %v956_v14 = vsel %vm946_vm1, %v4368_v10, 0.0  ;;  %v964_v17 = vmul.f32 %v4365_v9, %v4365_v9  ;;  %v3804_v24 = vld [vmem:[%s4284_s27 + $0x8] sm:$0xff]   ;;  %v3806_v26 = vld [vmem:[%s4284_s27] sm:$0xff]   ;;  %s4949_s9 = scalar_lea.vmem %s4948_s1, %s4265_s16 }
  0x70   : > { %954 = vadd.xlane.f32.xlu1 %v953_v11  ;;  %948 = vadd.xlane.f32.xlu0 %v947_v12  ;;  %v950_v15 = vsel %vm946_vm1, %v4375_v13, 0.0  ;;  %v965_v16 = vmul.f32 %v4375_v13, %v4375_v13  ;;  %v967_v20 = vmul.f32 %v4368_v10, %v4368_v10  ;;  %v966_v21 = vmul.f32 %v4362_v8, %v4362_v8  ;;  %v3805_v25 = vld [vmem:[%s4293_s17 + $0x8] sm:$0xff]   ;;  %v3807_v27 = vld [vmem:[%s4293_s17] sm:$0xff]   ;;  %s4947_s17 = scalar_lea.vmem %s4859_s2, %s4265_s16  ;;  %s4951_s21 = scalar_lea.vmem %s4950_s11, %s4265_s16 }
  0x71   : > { %v968_v19 = vsel %vm946_vm1, %v964_v17, 0.0  ;;  %3498 = vmatprep.subr.bf16.mxu0 %v3804_v24  ;;  %3506 = vmatprep.subr.bf16.mxu1 %v3805_v25  ;;  %v4398_v28 = vld [vmem:[%s4302_s6 + $0x8] sm:$0xff]   ;;  %v3337_v0 = vld [vmem:[%s4946_s0] ss:$0 sm:$0xff]  ;;  %vm1318_vm4 = vcmask 130048   ;;  %vm1515_vm5 = vcmask 1043456   ;;  %s4954_s29 = scalar_lea.vmem %s4953_s28, %s4265_s16 }
  0x72   : > { %v971_v18 = vsel %vm946_vm1, %v965_v16, 0.0  ;;  %v977_v22 = vsel %vm946_vm1, %v967_v20, 0.0  ;;  %v974_v23 = vsel %vm946_vm1, %v966_v21, 0.0  ;;  %3499 = vmatpush3.bf16.msra.mxu0 %v3804_v24  ;;  %3507 = vmatpush3.bf16.msra.mxu1 %v3805_v25  ;;  %v3338_v3 = vld [vmem:[%s4947_s17] ss:$0 sm:$0xff]  ;;  %s4959_s10 = scalar_lea.vmem %s4958_s20, %s4265_s16  ;;  %vm2018_vm6 = vcmask 257024  }
  0x73   : > { %3500 = vmatprep.subr.bf16.mxu0 %v3806_v26  ;;  %3508 = vmatprep.subr.bf16.mxu1 %v3807_v27  ;;  %v3809_v24 = vld [vmem:[%s4302_s6] sm:$0xff]   ;;  %s4956_s6 = sld [smem:[#allocation33_spill]] }
  0x74   : > { %957 = vadd.xlane.f32.xlu1 %v956_v14  ;;  %951 = vadd.xlane.f32.xlu0 %v950_v15  ;;  %v3339_v25 = vld [vmem:[%s4949_s9] ss:$0 sm:$0xff] }
  0x76   : > { %3501 = vmatpush3.bf16.msra.mxu0 %v3806_v26  ;;  %3509 = vmatpush3.bf16.msra.mxu1 %v3807_v27  ;;  %v3344_v26 = vld [vmem:[%s4951_s21] ss:$0 sm:$0xff] }
  0x77   : > { %3514 = vmatprep.subr.bf16.mxu0 %v4398_v28 }
  0x78   : > { %972 = vadd.xlane.f32.xlu1 %v971_v18  ;;  %969 = vadd.xlane.f32.xlu0 %v968_v19 }
  0x79   : > { %s4957_s23 = scalar_lea.vmem %s4956_s6, %s4265_s16 }
  0x7c   : > { %978 = vadd.xlane.f32.xlu1 %v977_v22  ;;  %975 = vadd.xlane.f32.xlu0 %v974_v23 }
  0xf9   : > { %v955_v29 = vpop.xlane.xlu1 %954  ;;  %v949_v30 = vpop.xlane.xlu0 %948 }
  0xfa   : > { %v960_v33 = vmul.f32 0.03125, %v949_v30  ;;  %v962_v35 = vmul.f32 0.03125, %v955_v29 }
  0xfc   : > { %v984_v39 = vmul.f32 %v960_v33, %v960_v33  ;;  %v986_v45 = vmul.f32 %v962_v35, %v962_v35  ;;  %v996_v63 = vsub.f32 %v4365_v9, %v960_v33  ;;  %v998_v11 = vsub.f32 %v4362_v8, %v962_v35 }
  0xfd   : > { %v958_v31 = vpop.xlane.xlu1 %957  ;;  %v952_v32 = vpop.xlane.xlu0 %951  ;;  %v4038_v8 = vmov 0.0  }
  0xfe   : > { %v961_v34 = vmul.f32 0.03125, %v952_v32  ;;  %v963_v36 = vmul.f32 0.03125, %v958_v31  ;;  %3522 = vmatprep.subr.bf16.mxu1 %v4038_v8 }
 0x100   : > { %v985_v40 = vmul.f32 %v961_v34, %v961_v34  ;;  %v987_v46 = vmul.f32 %v963_v36, %v963_v36  ;;  %v997_v61 = vsub.f32 %v4375_v13, %v961_v34  ;;  %v999_v5 = vsub.f32 %v4368_v10, %v963_v36 }
 0x101   : > { %v973_v37 = vpop.xlane.xlu1 %972  ;;  %v970_v38 = vpop.xlane.xlu0 %969 }
 0x102   : > { %v981_v41 = vmul.f32 0.03125, %v973_v37  ;;  %v980_v42 = vmul.f32 0.03125, %v970_v38 }
 0x104   : > { %v989_v43 = vsub.f32 %v981_v41, %v985_v40  ;;  %v988_v44 = vsub.f32 %v980_v42, %v984_v39  ;;  %v3349_v42 = vld [vmem:[%s885_s22] ss:$0 sm:$0xff]  ;;  %s4041_s22 = smov 112  }
 0x105   : > { %v979_v47 = vpop.xlane.xlu1 %978  ;;  %v976_v48 = vpop.xlane.xlu0 %975 }
 0x106   : > { %v993_v49 = vmax.f32 %v989_v43, 0.0  ;;  %v992_v50 = vmax.f32 %v988_v44, 0.0  ;;  %v983_v51 = vmul.f32 0.03125, %v979_v47  ;;  %v982_v52 = vmul.f32 0.03125, %v976_v48 }
 0x108   : > { %v1001_v53 = vadd.f32 1e-06, %v993_v49  ;;  %v1000_v54 = vadd.f32 1e-06, %v992_v50  ;;  %v991_v55 = vsub.f32 %v983_v51, %v987_v46  ;;  %v990_v56 = vsub.f32 %v982_v52, %v986_v45 }
 0x10a   : > { %3810 = vrsqrt.f32 %v1001_v53  ;;  %v995_v57 = vmax.f32 %v991_v55, 0.0  ;;  %v994_v58 = vmax.f32 %v990_v56, 0.0 }
 0x10b   : > { %3812 = vrsqrt.f32 %v1000_v54 }
 0x10c   : > { %v1003_v59 = vadd.f32 1e-06, %v995_v57  ;;  %v1002_v60 = vadd.f32 1e-06, %v994_v58 }
 0x10e   : > { %3814 = vrsqrt.f32 %v1003_v59 }
 0x10f   : > { %3816 = vrsqrt.f32 %v1002_v60 }
 0x117   : > { %v3811_v62 = vpop.eup %3810 }
 0x118   : > { %v3813_v1 = vpop.eup %3812  ;;  %v1009_v2 = vmul.f32 %v3811_v62, %v997_v61 }
 0x119   : > { %v1008_v4 = vmul.f32 %v3813_v1, %v996_v63 }
 0x11a   : > { %v1019_v6 = vmul.f32 %v3337_v0, %v1009_v2 }
 0x11b   : > { %v3815_v7 = vpop.eup %3814  ;;  %v1018_v12 = vmul.f32 %v3337_v0, %v1008_v4 }
 0x11c   : > { %v3817_v14 = vpop.eup %3816  ;;  %v1029_v15 = vadd.f32 %v3338_v3, %v1019_v6  ;;  %v1011_v16 = vmul.f32 %v3815_v7, %v999_v5 }
 0x11d   : > { %v1028_v17 = vadd.f32 %v3338_v3, %v1018_v12  ;;  %v1010_v18 = vmul.f32 %v3817_v14, %v998_v11 }
 0x11e   : > { %v1021_v19 = vmul.f32 %v3337_v0, %v1011_v16 }
 0x11f   : > { %v1032_v20 = vpack.c.bf16 %v1029_v15, %v1028_v17  ;;  %v1020_v21 = vmul.f32 %v3337_v0, %v1010_v18 }
 0x120   : > { %v1031_v22 = vadd.f32 %v3338_v3, %v1021_v19 }
 0x121   : > { %3502 = vmatprep.mubr.msk.bf16.mxu0 %vm946_vm1, %v1032_v20  ;;  %3510 = vmatprep.mubr.msk.bf16.mxu1 %vm946_vm1, %v1032_v20  ;;  %v1030_v10 = vadd.f32 %v3338_v3, %v1020_v21 }
 0x123   : > { %v1033_v23 = vpack.c.bf16 %v1031_v22, %v1030_v10 }
 0x125   : > { %3503 = vmatmul.mubr.msk.bf16.vlgmr.msra.gmra.mxu0 %vm946_vm1, %v1033_v23  ;;  %3511 = vmatmul.mubr.msk.bf16.vlgmr.msra.gmra.mxu1 %vm946_vm1, %v1033_v23 }
 0x126   : > { %3515 = vmatpush3.bf16.msra.mxu0 %v4398_v28  ;;  %3518 = vmatprep.mubr.msk.bf16.mxu0 %vm946_vm1, %v1032_v20 }
 0x127   : > { %3516 = vmatprep.subr.bf16.mxu0 %v3809_v24  ;;  %3524 = vmatprep.mubr.msk.bf16.mxu1 %vm4039_vm2, %v4038_v8 }
 0x12a   : > { %3517 = vmatpush3.bf16.msra.mxu0 %v3809_v24 }
 0x12b   : > { %3528 = vmatprep.subr.bf16.mxu0 %v4038_v8 }
 0x12d   : > { %3519 = vmatmul.mubr.msk.bf16.vlgmr.msra.gmra.mxu0 %vm946_vm1, %v1033_v23 }
 0x12e   : > { %3530 = vmatprep.mubr.msk.bf16.mxu0 %vm4039_vm2, %v4038_v8 }
 0x1e5   : > { %v3504_v27 = vpop.f32.mrf.mxu0  ;;  %v3512_v28 = vpop.f32.mrf.mxu1 }
 0x1e6   : > { %v1106_v29 = vadd.f32 %v3504_v27, %v3339_v25  ;;  %v1182_v30 = vadd.f32 %v3512_v28, %v3344_v26 }
 0x1e7   : > { %v1097_v31 = vpop.f32.mrf.mxu0  ;;  %v1173_v32 = vpop.f32.mrf.mxu1 }
 0x1e8   : > { %v1098_v33 = vadd.f32 %v3339_v25, %v1097_v31  ;;  %v1114_v38 = vmul.f32 0.35355338, %v1106_v29  ;;  %v1174_v39 = vadd.f32 %v3344_v26, %v1173_v32 }
 0x1e9   : > { %v3505_v34 = vpop.f32.mrf.mxu0  ;;  %v3513_v35 = vpop.f32.mrf.mxu1 }
 0x1ea   : > { %v1109_v36 = vadd.f32 %v3505_v34, %v3339_v25  ;;  %v1185_v37 = vadd.f32 %v3513_v35, %v3344_v26  ;;  %v1112_v47 = vmul.f32 0.35355338, %v1098_v33 }
 0x1eb   : > { %v1100_v40 = vpop.f32.mrf.mxu0  ;;  %v1176_v41 = vpop.f32.mrf.mxu1 }
 0x1ec   : > { %v1115_v43 = vmul.f32 0.35355338, %v1109_v36  ;;  %v4444_v44 = vpack.c.bf16 %v1185_v37, %v1182_v30  ;;  %v1101_v45 = vadd.f32 %v3339_v25, %v1100_v40  ;;  %v1177_v46 = vadd.f32 %v3344_v26, %v1176_v41  ;;  %v1267_v40 = vld [vmem:[%s4311_s5 + $0x4] sm:$0xf] }
 0x1ed   : > { %v3520_v48 = vpop.f32.mrf.mxu0  ;;  %v4497_v41 = vsel %vm1515_vm5, %v1267_v40, 0 }
 0x1ee   : > { %v4446_v49 = vpack.c.bf16 %v1115_v43, %v1114_v38  ;;  %v1113_v50 = vmul.f32 0.35355338, %v1101_v45  ;;  %v4448_v51 = vpack.c.bf16 %v1177_v46, %v1174_v39  ;;  %v1254_v52 = vadd.f32 %v3520_v48, %v3349_v42 }
 0x1ef   : > { %v1245_v53 = vpop.f32.mrf.mxu0 }
 0x1f0   : > { %v4450_v54 = vpack.c.bf16 %v1113_v50, %v1112_v47  ;;  %1391 = vrot.lane.b32.xlu0 %v4448_v51, %s4040_s24  ;;  %v1275_v55 = vsel %vm1270_vm3, %v4448_v51, 0  ;;  %v1246_v59 = vadd.f32 %v3349_v42, %v1245_v53 }
 0x1f1   : > { %v3521_v56 = vpop.f32.mrf.mxu0  ;;  %3523 = vmatpush3.bf16.xpose.msra.mxu1 %v1275_v55 }
 0x1f2   : > { %v1257_v57 = vadd.f32 %v3521_v56, %v3349_v42  ;;  %1388 = vrot.lane.b32.xlu1 %v4450_v54, %s4040_s24  ;;  %3534 = vmatprep.subr.bf16.mxu1 %v4038_v8 }
 0x1f3   : > { %v1248_v58 = vpop.f32.mrf.mxu0 }
 0x1f4   : > { %v4459_v60 = vpack.c.bf16 %v1257_v57, %v1254_v52  ;;  %v1249_v61 = vadd.f32 %v3349_v42, %v1248_v58  ;;  %v1266_v42 = vld [vmem:[%s4311_s5] sm:$0xf] }
 0x1f5   : > { %v4507_v43 = vsel %vm1515_vm5, %v1266_v42, 0 }
 0x1f6   : > { %v4461_v62 = vpack.c.bf16 %v1249_v61, %v1246_v59 }
 0x1f8   : > { %3525 = vmatmul.mubr.msk.bf16.vlgmr.msra.gmra.mxu1 %vm1270_vm3, %v4450_v54  ;;  %3529 = vmatpush3.bf16.msra.mxu0 %v4461_v62 }
 0x1f9   : > { %3536 = vmatprep.mubr.msk.bf16.mxu1 %vm4039_vm2, %v4038_v8  ;;  %3540 = vmatprep.subr.bf16.mxu0 %v4038_v8 }
 0x262   : > { %v1392_v63 = vpop.permute.xlu0 %1391 }
 0x263   : > { %v1397_v0 = vsel %vm1270_vm3, %v1392_v63, 0 }
 0x264   : > { %3535 = vmatpush3.bf16.xpose.msra.mxu1 %v1397_v0  ;;  %v1389_v1 = vpop.permute.xlu1 %1388 }
 0x265   : > { %3546 = vmatprep.subr.bf16.mxu1 %v4038_v8 }
 0x26b   : > { %3537 = vmatmul.mubr.msk.bf16.vlgmr.msra.gmra.mxu1 %vm1270_vm3, %v1389_v1 }
 0x26c   : > { %3548 = vmatprep.mubr.msk.bf16.mxu1 %vm4039_vm2, %v4038_v8  ;;  %3547 = vmatpush3.bf16.msra.mxu1 %v4497_v41 }
 0x26d   : > { %3558 = vmatprep.subr.bf16.mxu1 %v4038_v8 }
 0x2b8   : > { %v1311_v2 = vpop.f32.mrf.mxu1 }
 0x2b9   : > { %v1319_v3 = vsel %vm1318_vm4, %v1311_v2, -inf }
 0x2ba   : > { %1320 = vmax.xlane.f32.xlu1 %v1319_v3  ;;  %v3526_v4 = vpop.f32.mrf.mxu1 }
 0x2bc   : > { %v1314_v5 = vpop.f32.mrf.mxu1 }
 0x2bd   : > { %v1322_v6 = vsel %vm1318_vm4, %v1314_v5, -inf }
 0x2be   : > { %1323 = vmax.xlane.f32.xlu0 %v1322_v6  ;;  %v3527_v7 = vpop.f32.mrf.mxu1 }
 0x32b   : > { %v1433_v11 = vpop.f32.mrf.mxu1 }
 0x32c   : > { %v1440_v12 = vsel %vm1318_vm4, %v1433_v11, -inf }
 0x32d   : > { %1441 = vmax.xlane.f32.xlu0 %v1440_v12  ;;  %v3538_v14 = vpop.f32.mrf.mxu1 }
 0x32f   : > { %v1436_v15 = vpop.f32.mrf.mxu1 }
 0x330   : > { %v1443_v16 = vsel %vm1318_vm4, %v1436_v15, -inf }
 0x331   : > { %1444 = vmax.xlane.f32.xlu1 %v1443_v16  ;;  %v3539_v17 = vpop.f32.mrf.mxu1 }
 0x343   : > { %v1321_v18 = vpop.xlane.xlu1 %1320  ;;  %1460 = vrot.lane.b32.xlu0 %v4461_v62, %s4040_s24 }
 0x344   : > { %v1325_v19 = vsub.f32 %v1311_v2, %v1321_v18 }
 0x346   : > { %v1327_v20 = vmul.f32 1.442695, %v1325_v19 }
 0x347   : > { %v1324_v21 = vpop.xlane.xlu0 %1323  ;;  %1607 = vrot.lane.b32.xlu0 %v4450_v54, %s4041_s22 }
 0x348   : > { %v1326_v22 = vsub.f32 %v1314_v5, %v1324_v21  ;;  %3818 = vpow2.f32 %v1327_v20 }
 0x34a   : > { %v1329_v10 = vmul.f32 1.442695, %v1326_v22 }
 0x34c   : > { %3820 = vpow2.f32 %v1329_v10 }
 0x355   : > { %v3819_v23 = vpop.eup %3818 }
 0x356   : > { %v1331_v39 = vsel %vm1318_vm4, %v3819_v23, 0.0 }
 0x359   : > { %v3821_v24 = vpop.eup %3820 }
 0x35a   : > { %v1337_v25 = vpack.c.bf16 %v3821_v24, %v3819_v23  ;;  %v1334_v26 = vsel %vm1318_vm4, %v3821_v24, 0.0 }
 0x35c   : > { %3531 = vmatmul.mubr.msk.bf16.vlgmr.msra.gmra.mxu0 %vm1318_vm4, %v1337_v25 }
 0x35d   : > { %3542 = vmatprep.mubr.msk.bf16.mxu0 %vm4039_vm2, %v4038_v8 }
 0x366   : > { %1335 = vadd.xlane.f32.xlu0 %v1334_v26 }
 0x3b6   : > { %v1442_v27 = vpop.xlane.xlu0 %1441 }
 0x3b7   : > { %v1446_v28 = vsub.f32 %v1433_v11, %v1442_v27 }
 0x3b9   : > { %v1448_v29 = vmul.f32 1.442695, %v1446_v28 }
 0x3ba   : > { %v1461_v30 = vpop.permute.xlu0 %1460  ;;  %v1445_v31 = vpop.xlane.xlu1 %1444 }
 0x3bb   : > { %3822 = vpow2.f32 %v1448_v29  ;;  %v1447_v32 = vsub.f32 %v1436_v15, %v1445_v31  ;;  %3541 = vmatpush3.bf16.msra.mxu0 %v1461_v30 }
 0x3bc   : > { %3552 = vmatprep.subr.bf16.mxu0 %v4038_v8 }
 0x3bd   : > { %v1450_v33 = vmul.f32 1.442695, %v1447_v32 }
 0x3be   : > { %v1608_v53 = vpop.permute.xlu0 %1607 }
 0x3bf   : > { %3824 = vpow2.f32 %v1450_v33 }
 0x3c8   : > { %v3823_v34 = vpop.eup %3822 }
 0x3c9   : > { %v1452_v35 = vsel %vm1318_vm4, %v3823_v34, 0.0 }
 0x3ca   : > { %1453 = vadd.xlane.f32.xlu1 %v1452_v35 }
 0x3cc   : > { %v3825_v36 = vpop.eup %3824 }
 0x3cd   : > { %v1455_v37 = vsel %vm1318_vm4, %v3825_v36, 0.0  ;;  %v1458_v38 = vpack.c.bf16 %v3825_v36, %v3823_v34 }
 0x3ce   : > { %1456 = vadd.xlane.f32.xlu1 %v1455_v37 }
 0x3cf   : > { %3543 = vmatmul.mubr.msk.bf16.vlgmr.msra.gmra.mxu0 %vm1318_vm4, %v1458_v38 }
 0x3d0   : > { %3554 = vmatprep.mubr.msk.bf16.mxu0 %vm4039_vm2, %v4038_v8  ;;  %3553 = vmatpush3.bf16.msra.mxu0 %v4507_v43 }
 0x3d1   : > { %3564 = vmatprep.subr.bf16.mxu0 %v4038_v8 }
 0x3df   : > { %1609 = vrot.lane.b32.xlu1 %v4448_v51, %s4041_s22 }
 0x3ef   : > { %v1336_v56 = vpop.xlane.xlu0 %1335 }
 0x403   : > { %1332 = vadd.xlane.f32.xlu1 %v1331_v39 }
 0x414   : > { %1677 = vrot.lane.b32.xlu1 %v4461_v62, %s4041_s22 }
 0x418   : > { %1778 = vrot.lane.b32.xlu1 %v4450_v54, %s4042_s3 }
 0x41c   : > { %v1375_v45 = vpop.f32.mrf.mxu0 }
 0x41e   : > { %v3532_v46 = vpop.f32.mrf.mxu0 }
 0x41f   : > { %v1268_v46 = vld [vmem:[%s4311_s5 + $0x8] sm:$0xf] }
 0x420   : > { %v1378_v47 = vpop.f32.mrf.mxu0 }
 0x422   : > { %v3533_v48 = vpop.f32.mrf.mxu0 }
 0x453   : > { %v1454_v50 = vpop.xlane.xlu1 %1453 }
 0x454   : > { %3826 = vrcp.f32 %v1454_v50 }
 0x457   : > { %v1457_v52 = vpop.xlane.xlu1 %1456 }
 0x458   : > { %3828 = vrcp.f32 %v1457_v52 }
 0x459   : > { %3830 = vrcp.f32 %v1336_v56 }
 0x45b   : > { %v1610_v55 = vpop.permute.xlu1 %1609 }
 0x45c   : > { %v1615_v4 = vsel %vm1270_vm3, %v1610_v55, 0 }
 0x461   : > { %v3827_v59 = vpop.eup %3826 }
 0x465   : > { %v3829_v61 = vpop.eup %3828 }
 0x466   : > { %v3831_v5 = vpop.eup %3830 }
 0x467   : > { %v1385_v7 = vmul.f32 %v3831_v5, %v1378_v47  ;;  %v4543_v47 = vsel %vm1515_vm5, %v1268_v46, 0 }
 0x48c   : > { %v1333_v54 = vpop.xlane.xlu1 %1332 }
 0x48d   : > { %3832 = vrcp.f32 %v1333_v54 }
 0x48f   : > { %v1500_v57 = vpop.f32.mrf.mxu0 }
 0x490   : > { %v1509_v0 = vmul.f32 %v3827_v59, %v1500_v57  ;;  %v1678_v14 = vpop.permute.xlu1 %1677 }
 0x491   : > { %v3544_v58 = vpop.f32.mrf.mxu0 }
 0x493   : > { %v1503_v63 = vpop.f32.mrf.mxu0 }
 0x494   : > { %v1510_v1 = vmul.f32 %v3829_v61, %v1503_v63 }
 0x495   : > { %v3545_v2 = vpop.f32.mrf.mxu0 }
 0x496   : > { %v1511_v3 = vpack.c.bf16 %v1510_v1, %v1509_v0 }
 0x498   : > { %3549 = vmatmul.mubr.msk.bf16.vlgmr.msra.gmra.mxu1 %vm1270_vm3, %v1511_v3 }
 0x499   : > { %3559 = vmatpush3.bf16.xpose.msra.mxu1 %v1615_v4  ;;  %3560 = vmatprep.mubr.msk.bf16.mxu1 %vm4039_vm2, %v4038_v8 }
 0x49a   : > { %v3833_v6 = vpop.eup %3832  ;;  %3570 = vmatprep.subr.bf16.mxu1 %v4038_v8 }
 0x49b   : > { %v1384_v11 = vmul.f32 %v3833_v6, %v1375_v45  ;;  %v1779_v45 = vpop.permute.xlu1 %1778 }
 0x49d   : > { %v1386_v12 = vpack.c.bf16 %v1385_v7, %v1384_v11 }
 0x49f   : > { %3555 = vmatmul.mubr.msk.bf16.vlgmr.msra.gmra.mxu0 %vm1270_vm3, %v1386_v12 }
 0x4a0   : > { %3565 = vmatpush3.bf16.msra.mxu0 %v1678_v14  ;;  %3561 = vmatmul.mubr.msk.bf16.vlgmr.msra.gmra.mxu1 %vm1270_vm3, %v1608_v53 }
 0x4a1   : > { %3566 = vmatprep.mubr.msk.bf16.mxu0 %vm4039_vm2, %v4038_v8  ;;  %3576 = vmatprep.subr.bf16.mxu0 %v4038_v8 }
 0x4a2   : > { %3572 = vmatprep.mubr.msk.bf16.mxu1 %vm4039_vm2, %v4038_v8  ;;  %3571 = vmatpush3.bf16.msra.mxu1 %v4543_v47 }
 0x4a3   : > { %3582 = vmatprep.subr.bf16.mxu1 %v4038_v8 }
 0x558   : > { %v1553_v15 = vpop.f32.mrf.mxu1 }
 0x55a   : > { %v3550_v16 = vpop.f32.mrf.mxu1 }
 0x55c   : > { %v1556_v17 = vpop.f32.mrf.mxu1 }
 0x55e   : > { %v3551_v18 = vpop.f32.mrf.mxu1 }
 0x55f   : > { %v1600_v19 = vpop.f32.mrf.mxu0 }
 0x560   : > { %v4523_v20 = vadd.f32 %v1600_v19, %v1553_v15  ;;  %v1651_v21 = vpop.f32.mrf.mxu1 }
 0x561   : > { %v3556_v22 = vpop.f32.mrf.mxu0  ;;  %v1658_v10 = vsel %vm1318_vm4, %v1651_v21, -inf }
 0x562   : > { %1659 = vmax.xlane.f32.xlu0 %v1658_v10  ;;  %v3562_v23 = vpop.f32.mrf.mxu1 }
 0x563   : > { %v1603_v24 = vpop.f32.mrf.mxu0 }
 0x564   : > { %v4526_v25 = vadd.f32 %v1603_v24, %v1556_v17  ;;  %v1654_v26 = vpop.f32.mrf.mxu1 }
 0x565   : > { %v3557_v27 = vpop.f32.mrf.mxu0  ;;  %v1661_v28 = vsel %vm1318_vm4, %v1654_v26, -inf }
 0x566   : > { %1662 = vmax.xlane.f32.xlu0 %v1661_v28  ;;  %v3563_v29 = vpop.f32.mrf.mxu1 }
 0x57c   : > { %1780 = vrot.lane.b32.xlu0 %v4448_v51, %s4042_s3 }
 0x5eb   : > { %v1660_v30 = vpop.xlane.xlu0 %1659 }
 0x5ec   : > { %v1664_v31 = vsub.f32 %v1651_v21, %v1660_v30  ;;  %v2036_v21 = vsel %vm1270_vm3, %v4444_v44, 0 }
 0x5ee   : > { %v1666_v32 = vmul.f32 1.442695, %v1664_v31  ;;  %v1269_v31 = vld [vmem:[%s4311_s5 + $0xc] sm:$0xf] }
 0x5ef   : > { %v1663_v33 = vpop.xlane.xlu0 %1662 }
 0x5f0   : > { %3834 = vpow2.f32 %v1666_v32  ;;  %v1665_v34 = vsub.f32 %v1654_v26, %v1663_v33  ;;  %v4586_v32 = vsel %vm1515_vm5, %v1269_v31, 0 }
 0x5f2   : > { %v1668_v35 = vmul.f32 1.442695, %v1665_v34 }
 0x5f3   : > { %v1781_v39 = vpop.permute.xlu0 %1780 }
 0x5f4   : > { %3836 = vpow2.f32 %v1668_v35  ;;  %v1786_v51 = vsel %vm1270_vm3, %v1781_v39, 0 }
 0x5fd   : > { %v3835_v36 = vpop.eup %3834 }
 0x5fe   : > { %v1670_v37 = vsel %vm1318_vm4, %v3835_v36, 0.0 }
 0x5ff   : > { %1671 = vadd.xlane.f32.xlu1 %v1670_v37 }
 0x601   : > { %v3837_v38 = vpop.eup %3836 }
 0x602   : > { %v1673_v40 = vsel %vm1318_vm4, %v3837_v38, 0.0  ;;  %v1676_v42 = vpack.c.bf16 %v3837_v38, %v3835_v36 }
 0x603   : > { %1674 = vadd.xlane.f32.xlu0 %v1673_v40 }
 0x604   : > { %3567 = vmatmul.mubr.msk.bf16.vlgmr.msra.gmra.mxu0 %vm1318_vm4, %v1676_v42 }
 0x605   : > { %3577 = vmatpush3.bf16.xpose.msra.mxu0 %v1786_v51  ;;  %3578 = vmatprep.mubr.msk.bf16.mxu0 %vm4039_vm2, %v4038_v8 }
 0x606   : > { %3588 = vmatprep.subr.bf16.mxu0 %v4038_v8 }
 0x60c   : > { %3579 = vmatmul.mubr.msk.bf16.vlgmr.msra.gmra.mxu0 %vm1270_vm3, %v1779_v45 }
 0x60d   : > { %3590 = vmatprep.mubr.msk.bf16.mxu0 %vm4039_vm2, %v4038_v8  ;;  %3589 = vmatpush3.bf16.msra.mxu0 %v4586_v32 }
 0x60e   : > { %3600 = vmatprep.subr.bf16.mxu0 %v4038_v8 }
 0x688   : > { %v1672_v48 = vpop.xlane.xlu1 %1671 }
 0x689   : > { %3838 = vrcp.f32 %v1672_v48 }
 0x68c   : > { %v1675_v50 = vpop.xlane.xlu0 %1674 }
 0x68d   : > { %3840 = vrcp.f32 %v1675_v50 }
 0x696   : > { %v3839_v55 = vpop.eup %3838 }
 0x69a   : > { %v3841_v56 = vpop.eup %3840 }
 0x6c4   : > { %v1717_v52 = vpop.f32.mrf.mxu0 }
 0x6c5   : > { %v1726_v57 = vmul.f32 %v3839_v55, %v1717_v52 }
 0x6c6   : > { %v3568_v53 = vpop.f32.mrf.mxu0 }
 0x6c8   : > { %v1720_v54 = vpop.f32.mrf.mxu0 }
 0x6c9   : > { %v1727_v58 = vmul.f32 %v3841_v56, %v1720_v54 }
 0x6ca   : > { %v3569_v59 = vpop.f32.mrf.mxu0 }
 0x6cb   : > { %v1728_v61 = vpack.c.bf16 %v1727_v58, %v1726_v57 }
 0x6cc   : > { %v1822_v63 = vpop.f32.mrf.mxu0 }
 0x6cd   : > { %3573 = vmatmul.mubr.msk.bf16.vlgmr.msra.gmra.mxu1 %vm1270_vm3, %v1728_v61  ;;  %v1829_v0 = vsel %vm1318_vm4, %v1822_v63, -inf }
 0x6ce   : > { %1830 = vmax.xlane.f32.xlu0 %v1829_v0  ;;  %v3580_v1 = vpop.f32.mrf.mxu0  ;;  %3584 = vmatprep.mubr.msk.bf16.mxu1 %vm4039_vm2, %v4038_v8 }
 0x6d0   : > { %v1825_v2 = vpop.f32.mrf.mxu0 }
 0x6d1   : > { %v1832_v3 = vsel %vm1318_vm4, %v1825_v2, -inf }
 0x6d2   : > { %1833 = vmax.xlane.f32.xlu1 %v1832_v3  ;;  %v3581_v4 = vpop.f32.mrf.mxu0 }
 0x6e3   : > { %2151 = vrot.lane.b32.xlu1 %v4444_v44, %s4040_s24 }
 0x6e4   : > { %1848 = vrot.lane.b32.xlu0 %v4461_v62, %s4042_s3 }
 0x6e7   : > { %2148 = vrot.lane.b32.xlu1 %v4446_v49, %s4040_s24 }
 0x757   : > { %v1831_v5 = vpop.xlane.xlu0 %1830 }
 0x758   : > { %v1835_v6 = vsub.f32 %v1822_v63, %v1831_v5 }
 0x75a   : > { %v1837_v7 = vmul.f32 1.442695, %v1835_v6 }
 0x75b   : > { %v1834_v11 = vpop.xlane.xlu1 %1833  ;;  %v1849_v12 = vpop.permute.xlu0 %1848 }
 0x75c   : > { %3842 = vpow2.f32 %v1837_v7  ;;  %v1836_v14 = vsub.f32 %v1825_v2, %v1834_v11  ;;  %3583 = vmatpush3.bf16.msra.mxu1 %v1849_v12 }
 0x75d   : > { %3594 = vmatprep.subr.bf16.mxu1 %v4038_v8 }
 0x75e   : > { %v1839_v15 = vmul.f32 1.442695, %v1836_v14 }
 0x75f   : > { %v2152_v22 = vpop.permute.xlu1 %2151 }
 0x760   : > { %3844 = vpow2.f32 %v1839_v15  ;;  %v2157_v10 = vsel %vm1270_vm3, %v2152_v22, 0 }
 0x763   : > { %v2149_v23 = vpop.permute.xlu1 %2148 }
 0x769   : > { %v3843_v16 = vpop.eup %3842 }
 0x76a   : > { %v1841_v17 = vsel %vm1318_vm4, %v3843_v16, 0.0 }
 0x76b   : > { %1842 = vadd.xlane.f32.xlu1 %v1841_v17 }
 0x76d   : > { %v3845_v62 = vpop.eup %3844 }
 0x76e   : > { %v1844_v18 = vsel %vm1318_vm4, %v3845_v62, 0.0  ;;  %v1847_v19 = vpack.c.bf16 %v3845_v62, %v3843_v16 }
 0x76f   : > { %1845 = vadd.xlane.f32.xlu0 %v1844_v18 }
 0x770   : > { %3585 = vmatmul.mubr.msk.bf16.vlgmr.msra.gmra.mxu1 %vm1318_vm4, %v1847_v19 }
 0x771   : > { %3595 = vmatpush3.bf16.xpose.msra.mxu1 %v2036_v21  ;;  %3596 = vmatprep.mubr.msk.bf16.mxu1 %vm4039_vm2, %v4038_v8 }
 0x772   : > { %3606 = vmatprep.subr.bf16.mxu1 %v4038_v8 }
 0x778   : > { %3597 = vmatmul.mubr.msk.bf16.vlgmr.msra.gmra.mxu1 %vm1270_vm3, %v4446_v49 }
 0x779   : > { %3607 = vmatpush3.bf16.xpose.msra.mxu1 %v2157_v10  ;;  %3608 = vmatprep.mubr.msk.bf16.mxu1 %vm4039_vm2, %v4038_v8 }
 0x77a   : > { %3618 = vmatprep.subr.bf16.mxu1 %v4038_v8 }
 0x780   : > { %3609 = vmatmul.mubr.msk.bf16.vlgmr.msra.gmra.mxu1 %vm1270_vm3, %v2149_v23  ;;  %v4623_v23 = vld [vmem:[%s4954_s29] ss:$0 sm:$0xff] }
 0x781   : > { %3619 = vmatpush3.bf16.msra.mxu1 %v4497_v41  ;;  %3620 = vmatprep.mubr.msk.bf16.mxu1 %vm4039_vm2, %v4038_v8 }
 0x782   : > { %3630 = vmatprep.subr.bf16.mxu1 %v4038_v8 }
 0x78d   : > { %v1769_v24 = vpop.f32.mrf.mxu1 }
 0x78e   : > { %v4579_v26 = vadd.f32 %v1769_v24, %v4523_v20 }
 0x78f   : > { %v3574_v27 = vpop.f32.mrf.mxu1 }
 0x790   : > { %v4631_v27 = vld [vmem:[%s919_s25] ss:$0 sm:$0xff] }
 0x791   : > { %v1772_v28 = vpop.f32.mrf.mxu1 }
 0x792   : > { %v4582_v29 = vadd.f32 %v1772_v28, %v4526_v25 }
 0x793   : > { %v3575_v30 = vpop.f32.mrf.mxu1 }
 0x7f4   : > { %v1843_v41 = vpop.xlane.xlu1 %1842 }
 0x7f5   : > { %3846 = vrcp.f32 %v1843_v41 }
 0x7f8   : > { %v1846_v33 = vpop.xlane.xlu0 %1845 }
 0x7f9   : > { %3848 = vrcp.f32 %v1846_v33 }
 0x802   : > { %v3847_v35 = vpop.eup %3846 }
 0x806   : > { %v3849_v36 = vpop.eup %3848 }
 0x830   : > { %v1888_v20 = vpop.f32.mrf.mxu1 }
 0x831   : > { %v1897_v25 = vmul.f32 %v3847_v35, %v1888_v20 }
 0x832   : > { %v3586_v34 = vpop.f32.mrf.mxu1 }
 0x834   : > { %v1891_v37 = vpop.f32.mrf.mxu1 }
 0x835   : > { %v1898_v38 = vmul.f32 %v3849_v36, %v1891_v37 }
 0x836   : > { %v3587_v39 = vpop.f32.mrf.mxu1 }
 0x837   : > { %v1899_v40 = vpack.c.bf16 %v1898_v38, %v1897_v25 }
 0x838   : > { %v2072_v42 = vpop.f32.mrf.mxu1 }
 0x839   : > { %3591 = vmatmul.mubr.msk.bf16.vlgmr.msra.gmra.mxu0 %vm1270_vm3, %v1899_v40  ;;  %v2079_v51 = vsel %vm1318_vm4, %v2072_v42, -inf }
 0x83a   : > { %3601 = vmatpush3.bf16.msra.mxu0 %v4459_v60  ;;  %2080 = vmax.xlane.f32.xlu0 %v2079_v51  ;;  %v3598_v45 = vpop.f32.mrf.mxu1 }
 0x83b   : > { %3602 = vmatprep.mubr.msk.bf16.mxu0 %vm4039_vm2, %v4038_v8  ;;  %3612 = vmatprep.subr.bf16.mxu0 %v4038_v8 }
 0x83c   : > { %v2075_v46 = vpop.f32.mrf.mxu1 }
 0x83d   : > { %v2082_v48 = vsel %vm1318_vm4, %v2075_v46, -inf }
 0x83e   : > { %2083 = vmax.xlane.f32.xlu0 %v2082_v48  ;;  %v3599_v50 = vpop.f32.mrf.mxu1 }
 0x840   : > { %v2193_v52 = vpop.f32.mrf.mxu1 }
 0x841   : > { %v2200_v53 = vsel %vm1318_vm4, %v2193_v52, -inf }
 0x842   : > { %2201 = vmax.xlane.f32.xlu1 %v2200_v53  ;;  %v3610_v55 = vpop.f32.mrf.mxu1 }
 0x844   : > { %v2196_v56 = vpop.f32.mrf.mxu1 }
 0x845   : > { %v2203_v54 = vsel %vm1318_vm4, %v2196_v56, -inf }
 0x846   : > { %2204 = vmax.xlane.f32.xlu0 %v2203_v54  ;;  %v3611_v57 = vpop.f32.mrf.mxu1 }
 0x853   : > { %2220 = vrot.lane.b32.xlu1 %v4459_v60, %s4040_s24 }
 0x857   : > { %2360 = vrot.lane.b32.xlu1 %v4446_v49, %s4041_s22 }
 0x8c3   : > { %v2081_v58 = vpop.xlane.xlu0 %2080 }
 0x8c4   : > { %v2085_v59 = vsub.f32 %v2072_v42, %v2081_v58 }
 0x8c6   : > { %v2087_v61 = vmul.f32 1.442695, %v2085_v59 }
 0x8c7   : > { %v2084_v63 = vpop.xlane.xlu0 %2083 }
 0x8c8   : > { %3850 = vpow2.f32 %v2087_v61  ;;  %v2086_v0 = vsub.f32 %v2075_v46, %v2084_v63 }
 0x8ca   : > { %v2089_v1 = vmul.f32 1.442695, %v2086_v0 }
 0x8cb   : > { %v2202_v2 = vpop.xlane.xlu1 %2201 }
 0x8cc   : > { %3852 = vpow2.f32 %v2089_v1  ;;  %v2206_v3 = vsub.f32 %v2193_v52, %v2202_v2 }
 0x8ce   : > { %v2208_v4 = vmul.f32 1.442695, %v2206_v3 }
 0x8cf   : > { %v2205_v5 = vpop.xlane.xlu0 %2204  ;;  %v2221_v16 = vpop.permute.xlu1 %2220 }
 0x8d0   : > { %3854 = vpow2.f32 %v2208_v4  ;;  %v2207_v6 = vsub.f32 %v2196_v56, %v2205_v5 }
 0x8d2   : > { %v2210_v7 = vmul.f32 1.442695, %v2207_v6 }
 0x8d3   : > { %v2361_v36 = vpop.permute.xlu1 %2360 }
 0x8d4   : > { %3856 = vpow2.f32 %v2210_v7 }
 0x8d5   : > { %v3851_v11 = vpop.eup %3850 }
 0x8d6   : > { %v2091_v12 = vsel %vm1318_vm4, %v3851_v11, 0.0 }
 0x8d7   : > { %2092 = vadd.xlane.f32.xlu1 %v2091_v12 }
 0x8d9   : > { %v3853_v14 = vpop.eup %3852 }
 0x8da   : > { %v2097_v15 = vpack.c.bf16 %v3853_v14, %v3851_v11  ;;  %v2094_v34 = vsel %vm1318_vm4, %v3853_v14, 0.0 }
 0x8dc   : > { %3603 = vmatmul.mubr.msk.bf16.vlgmr.msra.gmra.mxu0 %vm1318_vm4, %v2097_v15 }
 0x8dd   : > { %v3855_v17 = vpop.eup %3854  ;;  %3613 = vmatpush3.bf16.msra.mxu0 %v2221_v16  ;;  %3614 = vmatprep.mubr.msk.bf16.mxu0 %vm4039_vm2, %v4038_v8 }
 0x8de   : > { %v2212_v62 = vsel %vm1318_vm4, %v3855_v17, 0.0  ;;  %3624 = vmatprep.subr.bf16.mxu0 %v4038_v8 }
 0x8df   : > { %2213 = vadd.xlane.f32.xlu0 %v2212_v62 }
 0x8e1   : > { %v3857_v18 = vpop.eup %3856 }
 0x8e2   : > { %v2215_v19 = vsel %vm1318_vm4, %v3857_v18, 0.0  ;;  %v2218_v21 = vpack.c.bf16 %v3857_v18, %v3855_v17 }
 0x8e3   : > { %2216 = vadd.xlane.f32.xlu0 %v2215_v19 }
 0x8e4   : > { %3615 = vmatmul.mubr.msk.bf16.vlgmr.msra.gmra.mxu0 %vm1318_vm4, %v2218_v21 }
 0x8e5   : > { %3625 = vmatpush3.bf16.msra.mxu0 %v4507_v43  ;;  %3626 = vmatprep.mubr.msk.bf16.mxu0 %vm4039_vm2, %v4038_v8 }
 0x8e6   : > { %3636 = vmatprep.subr.bf16.mxu0 %v4038_v8 }
 0x8f9   : > { %v1940_v22 = vpop.f32.mrf.mxu0  ;;  %2362 = vrot.lane.b32.xlu0 %v4444_v44, %s4041_s22 }
 0x8fa   : > { %v1947_v10 = vadd.f32 %v1940_v22, %v4579_v26 }
 0x8fb   : > { %v3592_v43 = vpop.f32.mrf.mxu0 }
 0x8fc   : > { %v1949_v24 = vadd.f32 %v1947_v10, %v4365_v9 }
 0x8fd   : > { %v1943_v28 = vpop.f32.mrf.mxu0 }
 0x8fe   : > { %v4634_v30 = vadd.f32 %v4623_v23, %v1949_v24  ;;  %v1948_v26 = vadd.f32 %v1943_v28, %v4582_v29 }
 0x8ff   : > { %v3593_v31 = vpop.f32.mrf.mxu0 }
 0x900   : > { %v2028_v41 = vadd.f32 %v4631_v27, %v4634_v30  ;;  %v1950_v33 = vadd.f32 %v1948_v26, %v4375_v13 }
 0x902   : > { %2030 = vst.msk [vmem:[%s4350_s12] sm:$0xff] %vm946_vm1, %v2028_v41  ;;  %v4643_v9 = vadd.f32 %v4623_v23, %v1950_v33 }
 0x904   : > { %v2029_v20 = vadd.f32 %v4631_v27, %v4643_v9 }
 0x906   : > { %2031 = vst.msk [vmem:[%s4350_s12 + $0x8] sm:$0xff] %vm946_vm1, %v2029_v20 }
 0x918   : > { %2095 = vadd.xlane.f32.xlu0 %v2094_v34 }
 0x92e   : > { %2430 = vrot.lane.b32.xlu0 %v4459_v60, %s4041_s22 }
 0x960   : > { %v2093_v25 = vpop.xlane.xlu1 %2092 }
 0x968   : > { %v2214_v29 = vpop.xlane.xlu0 %2213 }
 0x969   : > { %3858 = vrcp.f32 %v2214_v29 }
 0x96c   : > { %v2217_v35 = vpop.xlane.xlu0 %2216 }
 0x96d   : > { %3860 = vrcp.f32 %v2217_v35 }
 0x96e   : > { %3862 = vrcp.f32 %v2093_v25 }
 0x970   : > { %v2363_v37 = vpop.permute.xlu0 %2362 }
 0x971   : > { %v2368_v54 = vsel %vm1270_vm3, %v2363_v37, 0 }
 0x976   : > { %v3859_v46 = vpop.eup %3858 }
 0x97a   : > { %v3861_v48 = vpop.eup %3860 }
 0x97b   : > { %v3863_v57 = vpop.eup %3862 }
 0x99c   : > { %v2135_v13 = vpop.f32.mrf.mxu0 }
 0x99d   : > { %v2144_v59 = vmul.f32 %v3863_v57, %v2135_v13 }
 0x99e   : > { %v3604_v38 = vpop.f32.mrf.mxu0 }
 0x9a0   : > { %v2138_v39 = vpop.f32.mrf.mxu0 }
 0x9a1   : > { %v2096_v40 = vpop.xlane.xlu0 %2095 }
 0x9a2   : > { %3864 = vrcp.f32 %v2096_v40  ;;  %v3605_v42 = vpop.f32.mrf.mxu0 }
 0x9a4   : > { %v2260_v51 = vpop.f32.mrf.mxu0 }
 0x9a5   : > { %v2269_v52 = vmul.f32 %v3859_v46, %v2260_v51  ;;  %v2431_v0 = vpop.permute.xlu0 %2430 }
 0x9a6   : > { %v3616_v45 = vpop.f32.mrf.mxu0 }
 0x9a8   : > { %v2263_v50 = vpop.f32.mrf.mxu0 }
 0x9a9   : > { %v2270_v53 = vmul.f32 %v3861_v48, %v2263_v50 }
 0x9aa   : > { %v3617_v55 = vpop.f32.mrf.mxu0 }
 0x9ab   : > { %v2271_v56 = vpack.c.bf16 %v2270_v53, %v2269_v52 }
 0x9ad   : > { %3621 = vmatmul.mubr.msk.bf16.vlgmr.msra.gmra.mxu1 %vm1270_vm3, %v2271_v56 }
 0x9ae   : > { %3631 = vmatpush3.bf16.xpose.msra.mxu1 %v2368_v54  ;;  %3632 = vmatprep.mubr.msk.bf16.mxu1 %vm4039_vm2, %v4038_v8 }
 0x9af   : > { %v3865_v58 = vpop.eup %3864  ;;  %3642 = vmatprep.subr.bf16.mxu1 %v4038_v8 }
 0x9b0   : > { %v2145_v61 = vmul.f32 %v3865_v58, %v2138_v39 }
 0x9b2   : > { %v2146_v63 = vpack.c.bf16 %v2145_v61, %v2144_v59 }
 0x9b4   : > { %3627 = vmatmul.mubr.msk.bf16.vlgmr.msra.gmra.mxu0 %vm1270_vm3, %v2146_v63 }
 0x9b5   : > { %3637 = vmatpush3.bf16.msra.mxu0 %v2431_v0  ;;  %3633 = vmatmul.mubr.msk.bf16.vlgmr.msra.gmra.mxu1 %vm1270_vm3, %v2361_v36  ;;  %v1962_v0 = vsel %vm946_vm1, %v4634_v30, 0.0 }
 0x9b6   : > { %3638 = vmatprep.mubr.msk.bf16.mxu0 %vm4039_vm2, %v4038_v8  ;;  %3648 = vmatprep.subr.bf16.mxu0 %v4038_v8 }
 0x9b7   : > { %3643 = vmatpush3.bf16.msra.mxu1 %v4543_v47  ;;  %3644 = vmatprep.mubr.msk.bf16.mxu1 %vm4039_vm2, %v4038_v8 }
 0x9b8   : > { %3654 = vmatprep.subr.bf16.mxu1 %v4038_v8 }
 0xa6d   : > { %v2309_v1 = vpop.f32.mrf.mxu1 }
 0xa6f   : > { %v3622_v2 = vpop.f32.mrf.mxu1 }
 0xa70   : > { %v1970_v2 = vmul.f32 %v4634_v30, %v4634_v30 }
 0xa71   : > { %v2312_v3 = vpop.f32.mrf.mxu1 }
 0xa73   : > { %v3623_v4 = vpop.f32.mrf.mxu1 }
 0xa74   : > { %v2353_v5 = vpop.f32.mrf.mxu0  ;;  %v1971_v4 = vmul.f32 %v4643_v9, %v4643_v9 }
 0xa75   : > { %v4666_v6 = vadd.f32 %v2353_v5, %v2309_v1  ;;  %v2404_v7 = vpop.f32.mrf.mxu1  ;;  %v1965_v1 = vsel %vm946_vm1, %v4643_v9, 0.0 }
 0xa76   : > { %v3628_v11 = vpop.f32.mrf.mxu0  ;;  %v2411_v12 = vsel %vm1318_vm4, %v2404_v7, -inf  ;;  %v1975_v5 = vsel %vm946_vm1, %v1971_v4, 0.0 }
 0xa77   : > { %2412 = vmax.xlane.f32.xlu1 %v2411_v12  ;;  %v3634_v14 = vpop.f32.mrf.mxu1 }
 0xa78   : > { %v2356_v15 = vpop.f32.mrf.mxu0 }
 0xa79   : > { %v4669_v47 = vadd.f32 %v2356_v15, %v2312_v3  ;;  %v2407_v16 = vpop.f32.mrf.mxu1  ;;  %v1972_v3 = vsel %vm946_vm1, %v1970_v2, 0.0 }
 0xa7a   : > { %v3629_v17 = vpop.f32.mrf.mxu0  ;;  %v2414_v62 = vsel %vm1318_vm4, %v2407_v16, -inf }
 0xa7b   : > { %2415 = vmax.xlane.f32.xlu1 %v2414_v62  ;;  %v3635_v18 = vpop.f32.mrf.mxu1 }
 0xa8c   : > { %2530 = vrot.lane.b32.xlu1 %v4444_v44, %s4042_s3 }
 0xa90   : > { %2528 = vrot.lane.b32.xlu1 %v4446_v49, %s4042_s3 }
 0xb00   : > { %v2413_v19 = vpop.xlane.xlu1 %2412 }
 0xb01   : > { %v2417_v21 = vsub.f32 %v2404_v7, %v2413_v19 }
 0xb03   : > { %v2419_v22 = vmul.f32 1.442695, %v2417_v21 }
 0xb04   : > { %v2416_v10 = vpop.xlane.xlu1 %2415 }
 0xb05   : > { %3866 = vpow2.f32 %v2419_v22  ;;  %v2418_v43 = vsub.f32 %v2407_v16, %v2416_v10 }
 0xb07   : > { %v2421_v24 = vmul.f32 1.442695, %v2418_v43 }
 0xb08   : > { %v2531_v41 = vpop.permute.xlu1 %2530 }
 0xb09   : > { %3868 = vpow2.f32 %v2421_v24  ;;  %v2536_v49 = vsel %vm1270_vm3, %v2531_v41, 0 }
 0xb0c   : > { %v2529_v20 = vpop.permute.xlu1 %2528 }
 0xb12   : > { %v3867_v28 = vpop.eup %3866 }
 0xb13   : > { %v2423_v26 = vsel %vm1318_vm4, %v3867_v28, 0.0 }
 0xb14   : > { %2424 = vadd.xlane.f32.xlu1 %v2423_v26 }
 0xb16   : > { %v3869_v31 = vpop.eup %3868 }
 0xb17   : > { %v2426_v33 = vsel %vm1318_vm4, %v3869_v31, 0.0  ;;  %v2429_v44 = vpack.c.bf16 %v3869_v31, %v3867_v28 }
 0xb18   : > { %2427 = vadd.xlane.f32.xlu0 %v2426_v33 }
 0xb19   : > { %3639 = vmatmul.mubr.msk.bf16.vlgmr.msra.gmra.mxu0 %vm1318_vm4, %v2429_v44 }
 0xb1a   : > { %3649 = vmatpush3.bf16.xpose.msra.mxu0 %v2536_v49  ;;  %3650 = vmatprep.mubr.msk.bf16.mxu0 %vm4039_vm2, %v4038_v8 }
 0xb1b   : > { %3660 = vmatprep.subr.bf16.mxu0 %v4038_v8 }
 0xb21   : > { %3651 = vmatmul.mubr.msk.bf16.vlgmr.msra.gmra.mxu0 %vm1270_vm3, %v2529_v20 }
 0xb22   : > { %3661 = vmatpush3.bf16.msra.mxu0 %v4586_v32  ;;  %3662 = vmatprep.mubr.msk.bf16.mxu0 %vm4039_vm2, %v4038_v8 }
 0xb25   : > { %2598 = vrot.lane.b32.xlu1 %v4459_v60, %s4042_s3 }
 0xb9d   : > { %v2425_v34 = vpop.xlane.xlu1 %2424 }
 0xb9e   : > { %3870 = vrcp.f32 %v2425_v34 }
 0xba1   : > { %v2428_v29 = vpop.xlane.xlu0 %2427  ;;  %v2599_v51 = vpop.permute.xlu1 %2598 }
 0xba2   : > { %3872 = vrcp.f32 %v2428_v29  ;;  %v4715_v29 = vld [vmem:[%s4957_s23] ss:$0 sm:$0xff] }
 0xbab   : > { %v3871_v13 = vpop.eup %3870 }
 0xbaf   : > { %v3873_v37 = vpop.eup %3872 }
 0xbd9   : > { %v2470_v35 = vpop.f32.mrf.mxu0 }
 0xbda   : > { %v2479_v38 = vmul.f32 %v3871_v13, %v2470_v35 }
 0xbdb   : > { %v3640_v36 = vpop.f32.mrf.mxu0 }
 0xbdc   : > { %v4722_v36 = vld [vmem:[%s4959_s10] ss:$0 sm:$0xff] }
 0xbdd   : > { %v2473_v25 = vpop.f32.mrf.mxu0 }
 0xbde   : > { %v2480_v39 = vmul.f32 %v3873_v37, %v2473_v25 }
 0xbdf   : > { %v3641_v40 = vpop.f32.mrf.mxu0 }
 0xbe0   : > { %v2481_v42 = vpack.c.bf16 %v2480_v39, %v2479_v38 }
 0xbe1   : > { %v2572_v32 = vpop.f32.mrf.mxu0 }
 0xbe2   : > { %3645 = vmatmul.mubr.msk.bf16.vlgmr.msra.gmra.mxu1 %vm1270_vm3, %v2481_v42  ;;  %v2579_v45 = vsel %vm1318_vm4, %v2572_v32, -inf }
 0xbe3   : > { %3655 = vmatpush3.bf16.msra.mxu1 %v2599_v51  ;;  %2580 = vmax.xlane.f32.xlu0 %v2579_v45  ;;  %v3652_v60 = vpop.f32.mrf.mxu0 }
 0xbe4   : > { %3656 = vmatprep.mubr.msk.bf16.mxu1 %vm4039_vm2, %v4038_v8 }
 0xbe5   : > { %v2575_v46 = vpop.f32.mrf.mxu0 }
 0xbe6   : > { %v2582_v48 = vsel %vm1318_vm4, %v2575_v46, -inf }
 0xbe7   : > { %2583 = vmax.xlane.f32.xlu0 %v2582_v48  ;;  %v3653_v50 = vpop.f32.mrf.mxu0 }
 0xc6c   : > { %v2581_v52 = vpop.xlane.xlu0 %2580 }
 0xc6d   : > { %v2585_v53 = vsub.f32 %v2572_v32, %v2581_v52 }
 0xc6f   : > { %v2587_v55 = vmul.f32 1.442695, %v2585_v53 }
 0xc70   : > { %v2584_v56 = vpop.xlane.xlu0 %2583 }
 0xc71   : > { %3874 = vpow2.f32 %v2587_v55  ;;  %v2586_v54 = vsub.f32 %v2575_v46, %v2584_v56 }
 0xc73   : > { %v2589_v57 = vmul.f32 1.442695, %v2586_v54 }
 0xc75   : > { %3876 = vpow2.f32 %v2589_v57  ;;  %v3890_v57 = vld [vmem:[%s4350_s12 + $0x10] sm:$0xff] }
 0xc7e   : > { %v3875_v58 = vpop.eup %3874 }
 0xc7f   : > { %v2591_v59 = vsel %vm1318_vm4, %v3875_v58, 0.0 }
 0xc80   : > { %2592 = vadd.xlane.f32.xlu0 %v2591_v59 }
 0xc82   : > { %v3877_v61 = vpop.eup %3876 }
 0xc83   : > { %v2594_v8 = vsel %vm1318_vm4, %v3877_v61, 0.0  ;;  %v2597_v63 = vpack.c.bf16 %v3877_v61, %v3875_v58 }
 0xc84   : > { %2595 = vadd.xlane.f32.xlu0 %v2594_v8 }
 0xc85   : > { %3657 = vmatmul.mubr.msk.bf16.vlgmr.msra.gmra.mxu1 %vm1318_vm4, %v2597_v63 }
 0xc88   : > { %1963 = vadd.xlane.f32.xlu0 %v1962_v0 }
 0xc8c   : > { %1966 = vadd.xlane.f32.xlu0 %v1965_v1  ;;  %v3891_v1 = vld [vmem:[%s4350_s12 + $0x18] sm:$0xff] }
 0xc90   : > { %1973 = vadd.xlane.f32.xlu0 %v1972_v3 }
 0xc94   : > { %1976 = vadd.xlane.f32.xlu0 %v1975_v5 }
 0xca2   : > { %v2519_v7 = vpop.f32.mrf.mxu1 }
 0xca3   : > { %v2526_v11 = vadd.f32 %v2519_v7, %v4666_v6 }
 0xca4   : > { %v3646_v12 = vpop.f32.mrf.mxu1 }
 0xca6   : > { %v2522_v14 = vpop.f32.mrf.mxu1 }
 0xca7   : > { %v2527_v15 = vadd.f32 %v2522_v14, %v4669_v47 }
 0xca8   : > { %v3647_v16 = vpop.f32.mrf.mxu1 }
 0xd09   : > { %v2593_v17 = vpop.xlane.xlu0 %2592 }
 0xd0d   : > { %v2596_v62 = vpop.xlane.xlu0 %2595 }
 0xd11   : > { %v1964_v18 = vpop.xlane.xlu0 %1963 }
 0xd12   : > { %v1968_v21 = vmul.f32 0.03125, %v1964_v18 }
 0xd14   : > { %v1980_v10 = vmul.f32 %v1968_v21, %v1968_v21  ;;  %v1986_v20 = vsub.f32 %v4634_v30, %v1968_v21 }
 0xd15   : > { %v1967_v19 = vpop.xlane.xlu0 %1966 }
 0xd16   : > { %v1969_v43 = vmul.f32 0.03125, %v1967_v19 }
 0xd18   : > { %v1981_v31 = vmul.f32 %v1969_v43, %v1969_v43  ;;  %v1987_v13 = vsub.f32 %v4643_v9, %v1969_v43 }
 0xd19   : > { %v1974_v22 = vpop.xlane.xlu0 %1973 }
 0xd1a   : > { %v1978_v24 = vmul.f32 0.03125, %v1974_v22 }
 0xd1c   : > { %v1982_v28 = vsub.f32 %v1978_v24, %v1980_v10 }
 0xd1d   : > { %v1977_v26 = vpop.xlane.xlu0 %1976 }
 0xd1e   : > { %v1984_v6 = vmax.f32 %v1982_v28, 0.0  ;;  %v1979_v41 = vmul.f32 0.03125, %v1977_v26 }
 0xd20   : > { %v1988_v33 = vadd.f32 1e-06, %v1984_v6  ;;  %v1983_v44 = vsub.f32 %v1979_v41, %v1981_v31 }
 0xd22   : > { %3878 = vrsqrt.f32 %v1988_v33  ;;  %v1985_v47 = vmax.f32 %v1983_v44, 0.0 }
 0xd24   : > { %v1989_v49 = vadd.f32 1e-06, %v1985_v47 }
 0xd26   : > { %3880 = vrsqrt.f32 %v1989_v49 }
 0xd27   : > { %3882 = vrcp.f32 %v2593_v17 }
 0xd28   : > { %3884 = vrcp.f32 %v2596_v62 }
 0xd2f   : > { %v3879_v34 = vpop.eup %3878 }
 0xd30   : > { %v1992_v35 = vmul.f32 %v3879_v34, %v1986_v20 }
 0xd32   : > { %v2000_v37 = vmul.f32 %v4715_v29, %v1992_v35 }
 0xd33   : > { %v3881_v25 = vpop.eup %3880 }
 0xd34   : > { %v2008_v30 = vadd.f32 %v4722_v36, %v2000_v37  ;;  %v1993_v38 = vmul.f32 %v3881_v25, %v1987_v13  ;;  %v3883_v45 = vpop.eup %3882 }
 0xd35   : > { %v3885_v60 = vpop.eup %3884 }
 0xd36   : > { %v3418_v39 = vpack.c.bf16 %v2008_v30, %v2008_v30  ;;  %v2001_v40 = vmul.f32 %v4715_v29, %v1993_v38 }
 0xd38   : > { %2019 = vst.msk [vmem:[#allocation2] sm:$0xf] %vm2018_vm6, %v3418_v39  ;;  %v2009_v42 = vadd.f32 %v4722_v36, %v2001_v40 }
 0xd3a   : > { %v3419_v32 = vpack.c.bf16 %v2009_v42, %v2009_v42 }
 0xd3c   : > { %2020 = vst.msk [vmem:[#allocation2 + $0x4] sm:$0xf] %vm2018_vm6, %v3419_v32 }
 0xd45   : > { %v2638_v9 = vpop.f32.mrf.mxu1 }
 0xd46   : > { %v2647_v48 = vmul.f32 %v3883_v45, %v2638_v9 }
 0xd47   : > { %v3658_v51 = vpop.f32.mrf.mxu1 }
 0xd49   : > { %v2641_v46 = vpop.f32.mrf.mxu1 }
 0xd4a   : > { %v2648_v50 = vmul.f32 %v3885_v60, %v2641_v46 }
 0xd4b   : > { %v3659_v52 = vpop.f32.mrf.mxu1 }
 0xd4c   : > { %v2649_v53 = vpack.c.bf16 %v2648_v50, %v2647_v48 }
 0xd4e   : > { %3663 = vmatmul.mubr.msk.bf16.vlgmr.msra.gmra.mxu0 %vm1270_vm3, %v2649_v53 }
 0xe0e   : > { %v2687_v55 = vpop.f32.mrf.mxu0 }
 0xe0f   : > { %v2694_v56 = vadd.f32 %v2687_v55, %v2526_v11 }
 0xe10   : > { %v3664_v54 = vpop.f32.mrf.mxu0 }
 0xe11   : > { %v2696_v58 = vadd.f32 %v3890_v57, %v2694_v56 }
 0xe12   : > { %v2690_v59 = vpop.f32.mrf.mxu0 }
 0xe13   : > { %v2705_v61 = vadd.f32 %v4623_v23, %v2696_v58  ;;  %v2695_v8 = vadd.f32 %v2690_v59, %v2527_v15 }
 0xe14   : > { %v3665_v63 = vpop.f32.mrf.mxu0 }
 0xe15   : > { %v2774_v0 = vadd.f32 %v4631_v27, %v2705_v61  ;;  %v2697_v2 = vadd.f32 %v3891_v1, %v2695_v8  ;;  %v2709_v3 = vsel %vm946_vm1, %v2705_v61, 0.0  ;;  %v2717_v4 = vmul.f32 %v2705_v61, %v2705_v61 }
 0xe16   : > { %2710 = vadd.xlane.f32.xlu1 %v2709_v3 }
 0xe17   : > { %3390 = vst.msk [vmem:[%s4350_s12 + $0x10] sm:$0xff] %vm946_vm1, %v2774_v0  ;;  %v2706_v5 = vadd.f32 %v4623_v23, %v2697_v2  ;;  %v2719_v7 = vsel %vm946_vm1, %v2717_v4, 0.0 }
 0xe18   : > { %2720 = vadd.xlane.f32.xlu0 %v2719_v7 }
 0xe19   : > { %v2775_v11 = vadd.f32 %v4631_v27, %v2706_v5  ;;  %v2712_v12 = vsel %vm946_vm1, %v2706_v5, 0.0  ;;  %v2718_v14 = vmul.f32 %v2706_v5, %v2706_v5 }
 0xe1b   : > { %3391 = vst.msk [vmem:[%s4350_s12 + $0x18] sm:$0xff] %vm946_vm1, %v2775_v11  ;;  %v2722_v15 = vsel %vm946_vm1, %v2718_v14, 0.0 }
 0xe1c   : > { %2713 = vadd.xlane.f32.xlu0 %v2712_v12 }
 0xe20   : > { %2723 = vadd.xlane.f32.xlu0 %v2722_v15 }
 0xe9f   : > { %v2711_v16 = vpop.xlane.xlu1 %2710 }
 0xea0   : > { %v2715_v17 = vmul.f32 0.03125, %v2711_v16 }
 0xea1   : > { %v2721_v62 = vpop.xlane.xlu0 %2720 }
 0xea2   : > { %v2727_v18 = vmul.f32 %v2715_v17, %v2715_v17  ;;  %v2725_v19 = vmul.f32 0.03125, %v2721_v62  ;;  %v2733_v41 = vsub.f32 %v2705_v61, %v2715_v17 }
 0xea4   : > { %v2729_v23 = vsub.f32 %v2725_v19, %v2727_v18 }
 0xea5   : > { %v2714_v21 = vpop.xlane.xlu0 %2713 }
 0xea6   : > { %v2731_v22 = vmax.f32 %v2729_v23, 0.0  ;;  %v2716_v10 = vmul.f32 0.03125, %v2714_v21 }
 0xea8   : > { %v2735_v43 = vadd.f32 1e-06, %v2731_v22  ;;  %v2728_v24 = vmul.f32 %v2716_v10, %v2716_v10  ;;  %v2734_v34 = vsub.f32 %v2706_v5, %v2716_v10 }
 0xea9   : > { %v2724_v27 = vpop.xlane.xlu0 %2723 }
 0xeaa   : > { %3886 = vrsqrt.f32 %v2735_v43  ;;  %v2726_v28 = vmul.f32 0.03125, %v2724_v27 }
 0xeac   : > { %v2730_v26 = vsub.f32 %v2726_v28, %v2728_v24 }
 0xeae   : > { %v2732_v31 = vmax.f32 %v2730_v26, 0.0 }
 0xeb0   : > { %v2736_v6 = vadd.f32 1e-06, %v2732_v31 }
 0xeb2   : > { %3888 = vrsqrt.f32 %v2736_v6 }
 0xeb7   : > { %v3887_v33 = vpop.eup %3886 }
 0xeb8   : > { %v2739_v44 = vmul.f32 %v3887_v33, %v2733_v41 }
 0xeba   : > { %v2747_v47 = vmul.f32 %v4715_v29, %v2739_v44 }
 0xebc   : > { %v2755_v49 = vadd.f32 %v4722_v36, %v2747_v47 }
 0xebe   : > { %v3420_v20 = vpack.c.bf16 %v2755_v49, %v2755_v49 }
 0xebf   : > { %v3889_v35 = vpop.eup %3888 }
 0xec0   : > { %2765 = vst.msk [vmem:[#allocation2 + $0x8] sm:$0xf] %vm2018_vm6, %v3420_v20  ;;  %v2740_v13 = vmul.f32 %v3889_v35, %v2734_v34 }
 0xec2   : > { %v2748_v37 = vmul.f32 %v4715_v29, %v2740_v13 }
 0xec4   : > { %v2756_v25 = vadd.f32 %v4722_v36, %v2748_v37 }
 0xec6   : > { %v3421_v30 = vpack.c.bf16 %v2756_v25, %v2756_v25 }
 0xec8   : > { %2766 = vst.msk [vmem:[#allocation2 + $0xc] sm:$0xf] %vm2018_vm6, %v3421_v30 }
 0xec9 PF: > { %v3892_v38 = vld [vmem:[%s731_s19 + $0x8] sm:$0xff]   ;;  %v3893_v39 = vld [vmem:[%s731_s19] sm:$0xff]   ;;  %vm2816_vm7 = vcmask 261120   ;;  %s4961_s7 = sld [smem:[#allocation11_spill]]  ;;  %s3050_s21 = sshll.u32 %s4350_s12, 4  ;;  %s4786_s21 = int_to_ptr.vmem [resolvable:$true] %s3050_s21 }
 0xeca   : > { %3666 = vmatprep.subr.bf16.mxu0 %v3892_v38  ;;  %v3894_v40 = vld [vmem:[#allocation2] sm:$0xff]   ;;  %v3896_v36 = vld [vmem:[%s4346_s26 + $0x38] sm:$0xff]   ;;  %v3897_v42 = vld [vmem:[%s4346_s26 + $0x30] sm:$0xff]   ;;  %s4964_s13 = sld [smem:[#allocation39_spill]]  ;;  %s3912_s5 = scalar_lea.vmem %s4786_s21, 512 }
 0xecb   : > { %3667 = vmatpush3.bf16.msra.mxu0 %v3892_v38  ;;  %3670 = vmatprep.mubr.msk.bf16.mxu0 %vm2816_vm7, %v3894_v40  ;;  %v3898_v32 = vld [vmem:[%s4346_s26 + $0x28] sm:$0xff]   ;;  %v3899_v9 = vld [vmem:[%s4346_s26 + $0x20] sm:$0xff]   ;;  %v3900_v51 = vld [vmem:[%s4346_s26 + $0x18] sm:$0xff]   ;;  %p3913_p0 = scmp.ne.s32.totalorder %s4786_s21, %s3912_s5  ;;  %s4043_s4 = smov [#allocation4]  }
 0xecc   : > { %3668 = vmatprep.subr.bf16.mxu0 %v3893_v39  ;;  %3674 = vmatprep.subr.bf16.mxu1 %v3896_v36  ;;  %v3901_v45 = vld [vmem:[%s4346_s26 + $0x10] sm:$0xff]   ;;  %v3902_v60 = vld [vmem:[%s4346_s26 + $0x8] sm:$0xff]   ;;  %v3903_v46 = vld [vmem:[%s4346_s26] sm:$0xff]   ;;  %s3916_s28 = sshll.u32 %s4043_s4, 4  ;;  %s3917_s28 = int_to_ptr.vmem [resolvable:$false] %s3916_s28 }
 0xecd   : > { %3675 = vmatpush3.bf16.msra.mxu1 %v3896_v36  ;;  %v3392_v48 = vld [vmem:[%s906_s8] ss:$0 sm:$0xff]  ;;  %v3023_v37 = vld [vmem:[%s4350_s12] sm:$0xff]  ;;  %s4962_s8 = sld [smem:[#allocation8_spill]]  ;;  %v3026_v38 = vld [vmem:[%s4350_s12 + $0x18] sm:$0xff]  ;;  %p3914_p1 = pnand %p3913_p0, %p4222_p9 }
 0xece   : > { %3676 = vmatprep.subr.bf16.mxu1 %v3897_v42  ;;  %v3025_v35 = vld [vmem:[%s4350_s12 + $0x10] sm:$0xff]  ;;  %s3918_s29 = scalar_lea.vmem %s3917_s28, 1024  ;;  %p3919_p3 = scmp.lt.s32.totalorder %s4786_s21, %s3917_s28 }
 0xecf   : > { %v3895_v29 = vld [vmem:[#allocation2 + $0x8] sm:$0xff]   ;;  %3669 = vmatpush3.bf16.msra.mxu0 %v3893_v39  ;;  %s3423_s11 = sshll.u32 %s4961_s7, 9  ;;  %p3915_p2 = pneg %p3914_p1 }
 0xed0   : > { %s4784_s24 = scalar_lea.hbm %s4964_s13, %s3423_s11  ;;  %p3920_p4 = scmp.lt.s32.totalorder %s3918_s29, %s3912_s5 }
 0xed1   : > { %3677 = vmatpush3.bf16.msra.mxu1 %v3897_v42 }
 0xed2   : > { %3671 = vmatmul.mubr.msk.bf16.vlgmr.msra.gmra.mxu0 %vm2816_vm7, %v3895_v29  ;;  %3678 = vmatprep.subr.bf16.mxu1 %v3898_v32  ;;  %v3024_v29 = vld [vmem:[%s4350_s12 + $0x8] sm:$0xff]  ;;  %p3921_p5 = por %p3920_p4, %p3919_p3 }
 0xed3   : > { %s4965_s22 = sand.u32 1, %s4962_s8  }
 0xed4   : > { %s4794_s3 = scalar_lea.sflag [#allocation5], %s4965_s22  ;;  %p3922_p6 = pnand %p3921_p5, %p3915_p2 }
 0xed5   : > { %3679 = vmatpush3.bf16.msra.mxu1 %v3898_v32 }
 0xed6   : > { %3680 = vmatprep.subr.bf16.mxu1 %v3899_v9 }
 0xed9   : > { %3681 = vmatpush3.bf16.msra.mxu1 %v3899_v9 }
 0xeda   : > { %3682 = vmatprep.subr.bf16.mxu1 %v3900_v51 }
 0xedd   : > { %3683 = vmatpush3.bf16.msra.mxu1 %v3900_v51 }
 0xede   : > { %3684 = vmatprep.subr.bf16.mxu1 %v3901_v45 }
 0xee1   : > { %3685 = vmatpush3.bf16.msra.mxu1 %v3901_v45 }
 0xee2   : > { %3686 = vmatprep.subr.bf16.mxu1 %v3902_v60 }
 0xee5   : > { %3687 = vmatpush3.bf16.msra.mxu1 %v3902_v60 }
 0xee6   : > { %3688 = vmatprep.subr.bf16.mxu1 %v3903_v46 }
 0xee9   : > { %3689 = vmatpush3.bf16.msra.mxu1 %v3903_v46 }
 0xf92   : > { %v3672_v50 = vpop.f32.mrf.mxu0 }
 0xf93   : > { %v2866_v52 = vadd.f32 %v3672_v50, %v3392_v48 }
 0xf94   : > { %v2857_v53 = vpop.f32.mrf.mxu0 }
 0xf95   : > { %v2878_v55 = vmul.f32 0.044715, %v2866_v52  ;;  %v2858_v56 = vadd.f32 %v3392_v48, %v2857_v53  ;;  %v2874_v41 = vmul.f32 0.5, %v2866_v52 }
 0xf96   : > { %v3673_v54 = vpop.f32.mrf.mxu0 }
 0xf97   : > { %v2882_v57 = vmul.f32 %v2878_v55, %v2866_v52  ;;  %v2876_v58 = vmul.f32 0.044715, %v2858_v56  ;;  %v2869_v59 = vadd.f32 %v3673_v54, %v3392_v48  ;;  %v2872_v26 = vmul.f32 0.5, %v2858_v56 }
 0xf98   : > { %v2860_v61 = vpop.f32.mrf.mxu0 }
 0xf99   : > { %v2886_v8 = vmul.f32 %v2882_v57, %v2866_v52  ;;  %v2879_v63 = vmul.f32 0.044715, %v2869_v59  ;;  %v2861_v0 = vadd.f32 %v3392_v48, %v2860_v61  ;;  %v2880_v1 = vmul.f32 %v2876_v58, %v2858_v56 }
 0xf9a   : > { %v2875_v24 = vmul.f32 0.5, %v2869_v59 }
 0xf9b   : > { %v2883_v2 = vmul.f32 %v2879_v63, %v2869_v59  ;;  %v2877_v3 = vmul.f32 0.044715, %v2861_v0  ;;  %v2884_v4 = vmul.f32 %v2880_v1, %v2858_v56  ;;  %v2890_v5 = vadd.f32 %v2886_v8, %v2866_v52 }
 0xf9c   : > { %v2873_v31 = vmul.f32 0.5, %v2861_v0 }
 0xf9d   : > { %v2887_v7 = vmul.f32 %v2883_v2, %v2869_v59  ;;  %v2881_v11 = vmul.f32 %v2877_v3, %v2861_v0  ;;  %v2888_v12 = vadd.f32 %v2884_v4, %v2858_v56  ;;  %v2894_v14 = vmul.f32 0.7978846, %v2890_v5 }
 0xf9f   : > { %v2885_v15 = vmul.f32 %v2881_v11, %v2861_v0  ;;  %v2892_v16 = vmul.f32 0.7978846, %v2888_v12  ;;  %v2891_v17 = vadd.f32 %v2887_v7, %v2869_v59 }
 0xfa1   : > { %v2889_v62 = vadd.f32 %v2885_v15, %v2861_v0  ;;  %3904 = vtanh.f32 %v2892_v16  ;;  %v2895_v18 = vmul.f32 0.7978846, %v2891_v17 }
 0xfa2   : > { %3906 = vtanh.f32 %v2894_v14 }
 0xfa3   : > { %v2893_v19 = vmul.f32 0.7978846, %v2889_v62  ;;  %3908 = vtanh.f32 %v2895_v18 }
 0xfa5   : > { %3910 = vtanh.f32 %v2893_v19 }
 0xfae   : > { %v3905_v23 = vpop.eup %3904 }
 0xfaf   : > { %v3907_v21 = vpop.eup %3906  ;;  %v2900_v10 = vadd.f32 1.0, %v3905_v23 }
 0xfb0   : > { %v3909_v22 = vpop.eup %3908  ;;  %v2902_v28 = vadd.f32 1.0, %v3907_v21 }
 0xfb1   : > { %v2903_v43 = vadd.f32 1.0, %v3909_v22  ;;  %v2904_v44 = vmul.f32 %v2900_v10, %v2872_v26 }
 0xfb2   : > { %v3911_v27 = vpop.eup %3910  ;;  %v2906_v49 = vmul.f32 %v2902_v28, %v2874_v41 }
 0xfb3   : > { %v2901_v6 = vadd.f32 1.0, %v3911_v27  ;;  %v2907_v33 = vmul.f32 %v2903_v43, %v2875_v24 }
 0xfb5   : > { %v2905_v47 = vmul.f32 %v2901_v6, %v2873_v31  ;;  %v2909_v34 = vpack.c.bf16 %v2907_v33, %v2906_v49 }
 0xfb7   : > { %v2908_v20 = vpack.c.bf16 %v2905_v47, %v2904_v44 }
 0xfb9   : > { %3690 = vmatprep.mubr.bf16.mxu1 %v2908_v20 }
 0xfba   : > { %3691 = vmatmul.mubr.bf16.vlgmr.msra.gmra.mxu1 %v2909_v34 }
0x107a   : > { %v3692_v13 = vpop.f32.mrf.mxu1 }
0x107b   : > { %v3029_v25 = vadd.f32 %v3692_v13, %v3025_v35 }
0x107c   : > { %v3008_v30 = vpop.f32.mrf.mxu1 }
0x107d   : > { %3033 = vst.msk [vmem:[%s4350_s12 + $0x10] sm:$0xff] %vm2816_vm7, %v3029_v25  ;;  %v3027_v39 = vadd.f32 %v3023_v37, %v3008_v30 }
0x107e   : > { %v3693_v40 = vpop.f32.mrf.mxu1 }
0x107f   : > { %3031 = vst.msk [vmem:[%s4350_s12] sm:$0xff] %vm2816_vm7, %v3027_v39  ;;  %v3030_v36 = vadd.f32 %v3693_v40, %v3026_v38 }
0x1080   : > { %v3011_v42 = vpop.f32.mrf.mxu1 }
0x1081   : > { %3034 = vst.msk [vmem:[%s4350_s12 + $0x18] sm:$0xff] %vm2816_vm7, %v3030_v36  ;;  %v3028_v32 = vadd.f32 %v3024_v29, %v3011_v42 }
0x1083   : > { %3032 = vst.msk [vmem:[%s4350_s12 + $0x8] sm:$0xff] %vm2816_vm7, %v3028_v32 }
0x1084   : > { %3925 = shalt.err (!%p3922_p6)
}
0x1085   : > { %s3926_s12 = scalar_lea.hbm %s4784_s24, 512  ;;  %s3930_s27 = scalar_lea.hbm %s4964_s13, 1024 }
0x1086   : > { %p3927_p7 = scmp.ne.s32.totalorder %s4784_s24, %s3926_s12  ;;  %p3931_p11 = scmp.lt.s32.totalorder %s4784_s24, %s4964_s13 }
0x1087   : > { %p3932_p12 = scmp.lt.s32.totalorder %s3930_s27, %s3926_s12 }
0x1088   : > { %p3928_p8 = pnand %p3927_p7, %p4222_p9 }
0x1089   : > { %p3933_p0 = por %p3932_p12, %p3931_p11 }
0x108a   : > { %p3929_p10 = pneg %p3928_p8 }
0x108c   : > { %p3934_p1 = pnand %p3933_p0, %p3929_p10 }
0x108e   : > { %3937 = shalt.err (!%p3934_p1)
}
0x108f   : > { %s4044_s6 = smov 128   ;;  %s4045_s23 = smov 8  }
0x1090   : > { %3694 = dma.vmem_to_hbm [thread:$0]  (%p4222_p9), %s4786_s21, 512, %s4784_s24, %s4794_s3, %s4044_s6, %s4044_s6, %s4045_s23  }
0x1091 PF: > { %s4966_s1 = sld [smem:[#allocation15_spill]] }
0x1092   : > { %s4967_s9 = sld [smem:[#allocation7_spill]] }
0x1097   : > { %p3700_p2 = scmp.ge.s32.totalorder %s4966_s1, 2 }
0x1098   : > { %s3065_s10 = sand.u32 1, %s4967_s9  }
0x1099   : > { %p3697_p3 = pnand %p3700_p2, %p4238_p13  ;;  %s3066_s14 = scalar_lea.sflag [#allocation5], %s3065_s10 }
0x109b   : > { %p3698_p4 = pneg %p3697_p3 }
0x109d   : > { %3987 = dma.done.wait (%p3698_p4), %s3066_s14, 512  }
0x109e   : > { %3989 = vsyncadd (%p3698_p4), %s3066_s14, 4294966784  ;;  %s30_s20 = sadd.s32 1, %s4966_s1   ;;  %s4969_s24 = sld [smem:[#allocation8_spill]] }
0x109f   : > { %p27_p5 = scmp.ge.s32.totalorder %s30_s20, 10   ;;  %s4970_s25 = sld [smem:[#allocation9_spill]] }
0x10a0   : > { %s4971_s26 = sld [smem:[#allocation21_spill]] }
0x10a1   : > { %s4972_s27 = sld [smem:[#allocation10_spill]] }
0x10a2   : > { %s4973_s28 = sld [smem:[#allocation20_spill]] }
0x10a3   : > { %s4974_s29 = sld [smem:[#allocation12_spill]] }
0x10a4   : > { %s4975_s0 = sld [smem:[#allocation13_spill]]  ;;  %29 = sbr.rel (!%p27_p5) target bundleno = 25 (0x19), region = 226 }
0x10a5   : > { %s4976_s30 = sld [smem:[#allocation14_spill]] }
0x10a6   : > { %s4977_s18 = sld [smem:[#allocation16_spill]] }
0x10a7   : > { %s4978_s19 = sld [smem:[#allocation17_spill]] }
0x10a8   : > { %s4979_s1 = sld [smem:[#allocation19_spill]] }
0x10a9   :  { %3071 = vsyncpa [#allocation5], 1 }
0x10aa   :  { %3073 = vsyncpa [#allocation5 + $0x1], 1 }

</bundles_post_ra>
